<compile_context>
chip_gen: v6e
topology: v6e:2x2x1
jax: 0.10.0
libtpu: 0.0.40
codegen_flags: <defaults>
</compile_context>

<pallas_src>
import math

import jax
import jax.numpy as jnp
from jax.experimental import pallas as pl
from jax.experimental.pallas import tpu as pltpu


# ---------------------------------------------------------------------------
# Lane-shift helpers (per-segment zero padding is applied via masks in-kernel).
# Plain slice+concat: portable across Mosaic compile and TPU interpret mode.
# ---------------------------------------------------------------------------
def _shift_prev(x):
    """out[:, j] = x[:, j-1]; column 0 filled with zeros."""
    zero = jnp.zeros((x.shape[0], 1), x.dtype)
    return jnp.concatenate([zero, x[:, :-1]], axis=1)


def _shift_next(x):
    """out[:, j] = x[:, j+1]; last column filled with zeros."""
    zero = jnp.zeros((x.shape[0], 1), x.dtype)
    return jnp.concatenate([x[:, 1:], zero], axis=1)


# ---------------------------------------------------------------------------
# Kernel: a group of CCNN branches sharing (x, cond), one (.., lane_block) tile
# ---------------------------------------------------------------------------
def _make_ccnn_group_kernel(branch_meta, t_seg, cond_act, compute_dtype):
    """Fused CCNN forward on one lane block.

    Lane blocks hold whole per-batch segments of length t_seg, so the k=3 conv
    needs no cross-block halo; per-segment boundary masks emulate zero padding.
    branch_meta: per fused branch, dict(layers=[(c_in, c_out), ...], out_act=..).
    """
    n_out = len(branch_meta)

    def kernel(*refs):
        out_refs = refs[-n_out:]
        x_ref, cond_ref = refs[0], refs[1]
        params = refs[2:-n_out]

        lb = x_ref.shape[-1]
        col = jax.lax.broadcasted_iota(jnp.int32, (1, lb), 1)
        tpos = col % t_seg
        has_prev = tpos != 0                 # t-1 exists inside this segment
        has_next = tpos != (t_seg - 1)       # t+1 exists inside this segment

        x0 = x_ref[...].astype(jnp.float32)

        # Conditioner: streamed once per grid step, shared by every layer of
        # every fused branch; optional tanh fused here (t_query = tanh(ti)).
        c = cond_ref[...].astype(jnp.float32)
        if cond_act == "tanh":
            c = jnp.tanh(c)
        c_mm = c.astype(compute_dtype)

        idx = 0
        for bi, meta in enumerate(branch_meta):
            h = x0
            for c_in, c_out in meta["layers"]:
                w_ref, cb_ref, fw_ref, fb_ref = params[idx:idx + 4]
                idx += 4

                # Conv1d(k=3, pad=1) + folded BN: three accumulated MXU dots on
                # masked lane shifts (avoids the 3*C_in(+1)-row concat temp).
                h_mm = h.astype(compute_dtype)
                x_prev = jnp.where(has_prev, _shift_prev(h_mm), 0)
                x_next = jnp.where(has_next, _shift_next(h_mm), 0)
                w = w_ref[...]               # (3*c_out, c_in): taps stacked
                y = (jnp.dot(w[:c_out], x_prev,
                             preferred_element_type=jnp.float32)
                     + jnp.dot(w[c_out:2 * c_out], h_mm,
                               preferred_element_type=jnp.float32)
                     + jnp.dot(w[2 * c_out:], x_next,
                               preferred_element_type=jnp.float32)
                     + cb_ref[...])          # folded-BN bias, f32 epilogue
                y = jnp.maximum(y, 0.0)      # ReLU

                # FiLM: scale/shift projected from the shared conditioner by a
                # small in-kernel matmul (replaces streamed (2*C_out, Lb) slabs).
                film = (jnp.dot(fw_ref[...], c_mm,
                                preferred_element_type=jnp.float32)
                        + fb_ref[...])       # (2*c_out, lb) f32
                h = y * film[:c_out] + film[c_out:]

            # Bottom: pointwise LinearBlock1D (+ fused output activation).
            wb_ref, bb_ref = params[idx:idx + 2]
            idx += 2
            out = (jnp.dot(wb_ref[...], h.astype(compute_dtype),
                           preferred_element_type=jnp.float32)
                   + bb_ref[...])

            act = meta["out_act"]
            if act == "sigmoid":
                out = 1.0 / (1.0 + jnp.exp(-out))
            elif act == "softplus":
                out = jnp.maximum(out, 0.0) + jnp.log1p(jnp.exp(-jnp.abs(out)))

            out_refs[bi][...] = out.astype(out_refs[bi].dtype)

    return kernel


# ---------------------------------------------------------------------------
# Shared BN folding (used by both the wrapper and the pure-JAX reference)
# ---------------------------------------------------------------------------
def _fold_bn(lp):
    scale = lp["bn_gamma"] / jnp.sqrt(lp["bn_var"] + 1e-5)
    w = lp["conv_w"] * scale[:, None, None]
    b = (lp["conv_b"] - lp["bn_mean"]) * scale + lp["bn_beta"]
    return w, b


# ---------------------------------------------------------------------------
# Wrapper: one pallas_call running several CCNN branches that share (x, cond)
# ---------------------------------------------------------------------------
def ccnn_group_forward(x, cond, branches, *, cond_act=None,
                       compute_dtype=jnp.float32, lane_target=512):
    """x: (B, C0, T); cond: (B, D, Tc) with Tc in {1, T}.

    branches: list of dicts with keys
      params   : CCNN parameter dict (see build_ccnn_params)
      out_act  : None | "sigmoid" | "softplus"   (fused output activation)
      out_dtype: optional output dtype (default x.dtype)
    Returns one (B, C_last, T) array per branch.
    """
    B, C0, T = x.shape
    Bc, D, Tc = cond.shape
    assert Bc == B and Tc in (1, T), (cond.shape, x.shape)

    # Lane-block sizing: multiples of lcm(T, 128) -> lane-dense unmasked stores
    # and segment edges == block edges (no conv halo).  Prefer >= 2 grid steps
    # when the workload allows (pipelining; dual-TC sharding on v7x).
    L = B * T
    seg = math.lcm(T, 128)
    lane_block = -(-lane_target // seg) * seg
    half = -(-((L + 1) // 2) // seg) * seg
    lane_block = min(lane_block, max(seg, half))
    L_pad = -(-L // lane_block) * lane_block
    grid = (L_pad // lane_block,)

    def fold(a, dt):                         # (B, C, T) -> (C, B*T) -> pad
        c = a.shape[1]
        a = jnp.transpose(a, (1, 0, 2)).reshape(c, L)
        return jnp.pad(a, ((0, 0), (0, L_pad - L))).astype(dt)

    cond_full = cond if Tc == T else jnp.broadcast_to(cond, (B, D, T))

    flat = [fold(x, compute_dtype), fold(cond_full, compute_dtype)]
    in_specs = [pl.BlockSpec((C0, lane_block), lambda l: (0, l)),
                pl.BlockSpec((D, lane_block), lambda l: (0, l))]

    # TODO(synk): the grid-invariant parameter slabs below are double-buffered
    # by default; at realistic channel counts mark them pipeline_mode=
    # pl.Buffered(1) (or DMA once into scratch) to reclaim VMEM for wider lane
    # blocks on v7x's 64 MiB.
    branch_meta, out_shapes, out_specs = [], [], []
    param_bytes = 0
    for br in branches:
        p = br["params"]
        layer_meta = []
        for lp in p["layers"]:
            w, b = _fold_bn(lp)
            c_out, c_in, _ = w.shape
            # Conv taps stacked along sublanes: (3*c_out, c_in); K stays a
            # multiple of 8 (no ragged +1 bias row — bias added in epilogue).
            w_slab = jnp.concatenate([w[:, :, 0], w[:, :, 1], w[:, :, 2]],
                                     axis=0).astype(compute_dtype)
            conv_b = b[:, None]                                    # (c_out, 1)
            film_w = jnp.concatenate([lp["film_w_w"], lp["film_b_w"]],
                                     axis=0).astype(compute_dtype)  # (2c_out, D)
            film_b = jnp.concatenate([lp["film_w_b"], lp["film_b_b"]],
                                     axis=0)[:, None]               # (2c_out, 1)
            for arr in (w_slab, conv_b, film_w, film_b):
                flat.append(arr)
                in_specs.append(pl.BlockSpec(arr.shape, lambda l: (0, 0)))
                param_bytes += arr.size * arr.dtype.itemsize
            layer_meta.append((c_in, c_out))

        wb = p["bottom_w"].astype(compute_dtype)
        bb = p["bottom_b"][:, None]
        for arr in (wb, bb):
            flat.append(arr)
            in_specs.append(pl.BlockSpec(arr.shape, lambda l: (0, 0)))
            param_bytes += arr.size * arr.dtype.itemsize

        c_last = p["bottom_w"].shape[0]
        out_dt = jnp.dtype(br.get("out_dtype") or x.dtype)
        branch_meta.append(dict(layers=layer_meta, out_act=br.get("out_act")))
        out_shapes.append(jax.ShapeDtypeStruct((c_last, L_pad), out_dt))
        out_specs.append(pl.BlockSpec((c_last, lane_block), lambda l: (0, l)))

    # VMEM budget: double-buffered streams + params + headroom, capped well
    # below v7x's 64 MiB per-TensorCore VMEM.
    csize = jnp.dtype(compute_dtype).itemsize
    stream_bytes = (C0 + D) * lane_block * csize
    out_bytes = sum(s.shape[0] * lane_block * jnp.dtype(s.dtype).itemsize
                    for s in out_shapes)
    block_bytes = param_bytes + stream_bytes + out_bytes
    vmem_limit = int(min(48 << 20, max(16 << 20, 4 * block_bytes)))

    kernel = _make_ccnn_group_kernel(branch_meta, T, cond_act, compute_dtype)

    outs = pl.pallas_call(
        kernel,
        out_shape=tuple(out_shapes),
        grid_spec=pltpu.PrefetchScalarGridSpec(
            num_scalar_prefetch=0,
            grid=grid,
            in_specs=in_specs,
            out_specs=tuple(out_specs),
        ),
        compiler_params=pltpu.CompilerParams(
            dimension_semantics=("parallel",),
            vmem_limit_bytes=vmem_limit,
        ),
    )(*flat)
    if not isinstance(outs, (list, tuple)):
        outs = (outs,)

    results = []
    for o in outs:
        c_last = o.shape[0]
        r = o[:, :L].reshape(c_last, B, T)
        results.append(jnp.transpose(r, (1, 0, 2)))                # (B, C, T)
    return results


# ---------------------------------------------------------------------------
# Separator forward (after the CRepUnet front-end)
# ---------------------------------------------------------------------------
def separator_forward(h, query, sep_params, compute_dtype=jnp.float32):
    """h: (B, C_h, T) = CRepUnet(mixture, query).squeeze(1); query: (B, D, 1, 1).

    TODO(synk): CRepUnet (repSeparator) is not defined in the provided spec;
    `h` is taken as its already-computed output.
    """
    q = jnp.squeeze(query, axis=-2)          # (B, D, 1); tanh fused in-kernel

    (ti,) = ccnn_group_forward(
        h, q, [dict(params=sep_params["timbre"])],
        cond_act="tanh", compute_dtype=compute_dtype)

    # energy + pitch both read (h, tanh(ti)) -> one fused pallas_call.
    # p only feeds note/f0, so it may be emitted in the compute dtype.
    en_ratio, p = ccnn_group_forward(
        h, ti,
        [dict(params=sep_params["energy"], out_act="sigmoid"),
         dict(params=sep_params["pitch"], out_dtype=compute_dtype)],
        cond_act="tanh", compute_dtype=compute_dtype)

    # note + f0 both read (p, tanh(ti)) -> one fused pallas_call.
    note, f0 = ccnn_group_forward(
        p, ti,
        [dict(params=sep_params["note"]),
         dict(params=sep_params["f0"], out_act="softplus")],
        cond_act="tanh", compute_dtype=compute_dtype)

    return ti, note, f0, en_ratio


# ---------------------------------------------------------------------------
# Pure-JAX reference
# ---------------------------------------------------------------------------
def ccnn_reference(x, cond, params):
    for lp in params["layers"]:
        w, b = _fold_bn(lp)
        y = jax.lax.conv_general_dilated(
            x, w, window_strides=(1,), padding=((1, 1),),
            dimension_numbers=("NCH", "OIH", "NCH")) + b[None, :, None]
        y = jnp.maximum(y, 0.0)
        fw = (jnp.einsum("od,bdt->bot", lp["film_w_w"], cond)
              + lp["film_w_b"][None, :, None])
        fb = (jnp.einsum("od,bdt->bot", lp["film_b_w"], cond)
              + lp["film_b_b"][None, :, None])
        x = y * fw + fb
    return (jnp.einsum("oc,bct->bot", params["bottom_w"], x)
            + params["bottom_b"][None, :, None])


def separator_reference(h, query, sep_params):
    q = jnp.tanh(jnp.squeeze(query, axis=-2))
    ti = ccnn_reference(h, q, sep_params["timbre"])
    t_query = jnp.tanh(ti)
    en = ccnn_reference(h, t_query, sep_params["energy"])
    p = ccnn_reference(h, t_query, sep_params["pitch"])
    note = ccnn_reference(p, t_query, sep_params["note"])
    f0 = ccnn_reference(p, t_query, sep_params["f0"])
    return ti, note, jax.nn.softplus(f0), jax.nn.sigmoid(en)


# ---------------------------------------------------------------------------
# Deterministic parameter construction (raw conv/BN/FiLM params)
# ---------------------------------------------------------------------------
def build_ccnn_params(key, channels, condition_dim):
    n_layers = len(channels) - 2
    keys = jax.random.split(key, 5 * n_layers + 2)
    k = 0
    layers = []
    for i in range(n_layers):
        cin, cout = channels[i], channels[i + 1]
        layers.append(dict(
            conv_w=0.2 * jax.random.normal(keys[k + 0], (cout, cin, 3), jnp.float32),
            conv_b=0.1 * jax.random.normal(keys[k + 1], (cout,), jnp.float32),
            bn_gamma=1.0 + 0.05 * jnp.arange(cout, dtype=jnp.float32),
            bn_beta=0.01 * jnp.arange(cout, dtype=jnp.float32),
            bn_mean=0.02 * jnp.arange(cout, dtype=jnp.float32),
            bn_var=1.0 + 0.03 * jnp.arange(cout, dtype=jnp.float32),
            film_w_w=0.2 * jax.random.normal(keys[k + 2], (cout, condition_dim), jnp.float32),
            film_w_b=jnp.ones((cout,), jnp.float32),
            film_b_w=0.2 * jax.random.normal(keys[k + 3], (cout, condition_dim), jnp.float32),
            film_b_b=0.05 * jax.random.normal(keys[k + 4], (cout,), jnp.float32),
        ))
        k += 5
    c_pen, c_out = channels[-2], channels[-1]
    return dict(
        layers=layers,
        bottom_w=0.2 * jax.random.normal(keys[k], (c_out, c_pen), jnp.float32),
        bottom_b=0.05 * jax.random.normal(keys[k + 1], (c_out,), jnp.float32),
    )


# ---------------------------------------------------------------------------
if __name__ == "__main__":
    # The real TIMBRE_CHANNELS / etc. constants are not in the spec; small
    # multiples of 8 keep TPU layouts clean.  TIMBRE_CHANNELS[-1] must equal
    # the condition width, since tanh(ti) conditions the other extractors.
    CONDITION_DIM = 8
    TIMBRE_CHANNELS = [8, 16, 16, 8]
    ENERGY_CHANNELS = [8, 16, 8]
    PITCH_CHANNELS = [8, 16, 16]
    NOTE_CHANNELS = [16, 16, 8]
    F0_CHANNELS = [16, 16, 8]
    B, T = 2, 16

    key = jax.random.PRNGKey(0)
    kh, kq, k1, k2, k3, k4, k5 = jax.random.split(key, 7)
    # h stands in for CRepUnet(mixture, query).squeeze(1)  (see TODO above).
    h = jax.random.normal(kh, (B, TIMBRE_CHANNELS[0], T), jnp.float32)
    query = jax.random.normal(kq, (B, CONDITION_DIM, 1, 1), jnp.float32)

    sep_params = dict(
        timbre=build_ccnn_params(k1, TIMBRE_CHANNELS, CONDITION_DIM),
        energy=build_ccnn_params(k2, ENERGY_CHANNELS, TIMBRE_CHANNELS[-1]),
        pitch=build_ccnn_params(k3, PITCH_CHANNELS, TIMBRE_CHANNELS[-1]),
        note=build_ccnn_params(k4, NOTE_CHANNELS, TIMBRE_CHANNELS[-1]),
        f0=build_ccnn_params(k5, F0_CHANNELS, TIMBRE_CHANNELS[-1]),
    )

    fwd = jax.jit(separator_forward, static_argnames=("compute_dtype",))

    # f32 path: checked against the pure-JAX reference.  Tolerance allows for
    # differing f32-matmul pass decompositions between Mosaic and XLA:TPU.
    outs = jax.block_until_ready(fwd(h, query, sep_params,
                                     compute_dtype=jnp.float32))
    refs = jax.block_until_ready(separator_reference(h, query, sep_params))
    for name, o, r in zip(("ti", "note", "f0", "en_ratio"), outs, refs):
        assert o.shape == r.shape, (name, o.shape, r.shape)
        err = float(jnp.max(jnp.abs(o.astype(jnp.float32) - r)))
        tol = 1e-2 * (1.0 + float(jnp.max(jnp.abs(r))))
        assert err < tol, (name, err, tol)

    # bf16 streaming/MXU path (valid on v5e/v6e/v7x): f32 accumulation and f32
    # epilogue, looser tolerance.  Checked on the timbre extractor.
    (ti_bf16,) = ccnn_group_forward(
        h, jnp.squeeze(query, axis=-2),
        [dict(params=sep_params["timbre"])],
        cond_act="tanh", compute_dtype=jnp.bfloat16)
    jax.block_until_ready(ti_bf16)
    ref_ti = refs[0]
    err = float(jnp.max(jnp.abs(ti_bf16.astype(jnp.float32) - ref_ti)))
    assert err < 0.06 * (1.0 + float(jnp.max(jnp.abs(ref_ti)))), err

    print("KERNEL_OK")
</pallas_src>

<mosaic_0001>
module attributes {stable_mosaic.version = 11 : i64} {
  func.func @kernel(%arg0: i32, %arg1: memref<8x128xf32, #tpu.memory_space<vmem>>, %arg2: memref<8x128xf32, #tpu.memory_space<vmem>>, %arg3: memref<48x8xf32, #tpu.memory_space<vmem>>, %arg4: memref<16x1xf32, #tpu.memory_space<vmem>>, %arg5: memref<32x8xf32, #tpu.memory_space<vmem>>, %arg6: memref<32x1xf32, #tpu.memory_space<vmem>>, %arg7: memref<48x16xf32, #tpu.memory_space<vmem>>, %arg8: memref<16x1xf32, #tpu.memory_space<vmem>>, %arg9: memref<32x8xf32, #tpu.memory_space<vmem>>, %arg10: memref<32x1xf32, #tpu.memory_space<vmem>>, %arg11: memref<8x16xf32, #tpu.memory_space<vmem>>, %arg12: memref<8x1xf32, #tpu.memory_space<vmem>>, %arg13: memref<8x128xf32, #tpu.memory_space<vmem>>) attributes {dimension_semantics = [#tpu.dimension_semantics<parallel>], iteration_bounds = array<i64: 1>, scalar_prefetch = 0 : i64, scratch_operands = 0 : i64, tpu.core_type = #tpu.core_type<tc>, window_params = [{transform_indices = @transform_0, window_bounds = array<i64: 8, 128>}, {transform_indices = @transform_1, window_bounds = array<i64: 8, 128>}, {pipeline_mode = #tpu.pipeline_mode<synchronous>, transform_indices = @transform_2, window_bounds = array<i64: 48, 8>}, {pipeline_mode = #tpu.pipeline_mode<synchronous>, transform_indices = @transform_3, window_bounds = array<i64: 16, 1>}, {pipeline_mode = #tpu.pipeline_mode<synchronous>, transform_indices = @transform_4, window_bounds = array<i64: 32, 8>}, {pipeline_mode = #tpu.pipeline_mode<synchronous>, transform_indices = @transform_5, window_bounds = array<i64: 32, 1>}, {pipeline_mode = #tpu.pipeline_mode<synchronous>, transform_indices = @transform_6, window_bounds = array<i64: 48, 16>}, {pipeline_mode = #tpu.pipeline_mode<synchronous>, transform_indices = @transform_7, window_bounds = array<i64: 16, 1>}, {pipeline_mode = #tpu.pipeline_mode<synchronous>, transform_indices = @transform_8, window_bounds = array<i64: 32, 8>}, {pipeline_mode = #tpu.pipeline_mode<synchronous>, transform_indices = @transform_9, window_bounds = array<i64: 32, 1>}, {pipeline_mode = #tpu.pipeline_mode<synchronous>, transform_indices = @transform_10, window_bounds = array<i64: 8, 16>}, {pipeline_mode = #tpu.pipeline_mode<synchronous>, transform_indices = @transform_11, window_bounds = array<i64: 8, 1>}, {transform_indices = @transform_12, window_bounds = array<i64: 8, 128>}]} {
    %0 = tpu.iota {dimensions = array<i32: 1>} : vector<1x128xi32>
    %c16_i32 = arith.constant 16 : i32
    %c0_i32 = arith.constant 0 : i32
    %1 = arith.cmpi eq, %c16_i32, %c0_i32 : i32
    %c1_i32 = arith.constant 1 : i32
    %2 = arith.select %1, %c1_i32, %c16_i32 : i32
    %3 = vector.broadcast %2 : i32 to vector<1x128xi32>
    %4 = arith.remsi %0, %3 : vector<1x128xi32>
    %c0_i32_0 = arith.constant 0 : i32
    %5 = vector.broadcast %c0_i32_0 : i32 to vector<1x128xi32>
    %6 = arith.cmpi ne, %4, %5 : vector<1x128xi32>
    %c0_i32_1 = arith.constant 0 : i32
    %7 = vector.broadcast %c0_i32_1 : i32 to vector<1x128xi32>
    %8 = arith.cmpi slt, %4, %7 : vector<1x128xi32>
    %c0_i32_2 = arith.constant 0 : i32
    %9 = arith.cmpi slt, %2, %c0_i32_2 : i32
    %10 = vector.broadcast %9 : i1 to vector<1x128xi1>
    %11 = vector.broadcast %10 : vector<1x128xi1> to vector<1x128xi1>
    %12 = arith.xori %8, %11 : vector<1x128xi1>
    %13 = arith.andi %12, %6 : vector<1x128xi1>
    %14 = vector.broadcast %2 : i32 to vector<1x128xi32>
    %15 = arith.addi %4, %14 : vector<1x128xi32>
    %16 = arith.select %13, %15, %4 : vector<1x128xi1>, vector<1x128xi32>
    %c0_i32_3 = arith.constant 0 : i32
    %17 = vector.broadcast %c0_i32_3 : i32 to vector<1x128xi32>
    %18 = arith.cmpi ne, %16, %17 : vector<1x128xi32>
    %c15_i32 = arith.constant 15 : i32
    %19 = vector.broadcast %c15_i32 : i32 to vector<1x128xi32>
    %20 = arith.cmpi ne, %16, %19 : vector<1x128xi32>
    %c0 = arith.constant 0 : index
    %c0_4 = arith.constant 0 : index
    %21 = vector.load %arg1[%c0, %c0_4] : memref<8x128xf32, #tpu.memory_space<vmem>>, vector<8x128xf32>
    %c0_5 = arith.constant 0 : index
    %c0_6 = arith.constant 0 : index
    %22 = vector.load %arg2[%c0_5, %c0_6] : memref<8x128xf32, #tpu.memory_space<vmem>>, vector<8x128xf32>
    %23 = math.tanh %22 : vector<8x128xf32>
    %cst = arith.constant 0.000000e+00 : f32
    %24 = vector.broadcast %cst : f32 to vector<8x1xf32>
    %25 = vector.extract_strided_slice %21 {offsets = [0, 0], sizes = [8, 127], strides = [1, 1]} : vector<8x128xf32> to vector<8x127xf32>
    %26 = tpu.concatenate %24, %25 in 1 : vector<8x1xf32>, vector<8x127xf32> -> vector<8x128xf32>
    %c0_i32_7 = arith.constant 0 : i32
    %27 = arith.sitofp %c0_i32_7 : i32 to f32
    %28 = vector.shape_cast %18 : vector<1x128xi1> to vector<1x128xi1>
    %29 = vector.broadcast %28 : vector<1x128xi1> to vector<8x128xi1>
    %30 = vector.broadcast %27 : f32 to vector<8x128xf32>
    %31 = arith.select %29, %26, %30 : vector<8x128xi1>, vector<8x128xf32>
    %cst_8 = arith.constant 0.000000e+00 : f32
    %32 = vector.broadcast %cst_8 : f32 to vector<8x1xf32>
    %33 = vector.extract_strided_slice %21 {offsets = [0, 1], sizes = [8, 127], strides = [1, 1]} : vector<8x128xf32> to vector<8x127xf32>
    %34 = tpu.concatenate %33, %32 in 1 : vector<8x127xf32>, vector<8x1xf32> -> vector<8x128xf32>
    %c0_i32_9 = arith.constant 0 : i32
    %35 = arith.sitofp %c0_i32_9 : i32 to f32
    %36 = vector.shape_cast %20 : vector<1x128xi1> to vector<1x128xi1>
    %37 = vector.broadcast %36 : vector<1x128xi1> to vector<8x128xi1>
    %38 = vector.broadcast %35 : f32 to vector<8x128xf32>
    %39 = arith.select %37, %34, %38 : vector<8x128xi1>, vector<8x128xf32>
    %c0_10 = arith.constant 0 : index
    %c0_11 = arith.constant 0 : index
    %40 = vector.load %arg3[%c0_10, %c0_11] : memref<48x8xf32, #tpu.memory_space<vmem>>, vector<48x8xf32>
    %41 = vector.extract_strided_slice %40 {offsets = [0, 0], sizes = [16, 8], strides = [1, 1]} : vector<48x8xf32> to vector<16x8xf32>
    %cst_12 = arith.constant dense<0.000000e+00> : vector<16x128xf32>
    %42 = tpu.matmul %41, %31, %cst_12 {dimension_numbers = #tpu.dot_dimension_numbers<[1], [0], [0], [1], [0, 0, 1, 1], [], []>} : vector<16x8xf32>, vector<8x128xf32>, vector<16x128xf32> -> vector<16x128xf32>
    %43 = vector.extract_strided_slice %40 {offsets = [16, 0], sizes = [16, 8], strides = [1, 1]} : vector<48x8xf32> to vector<16x8xf32>
    %cst_13 = arith.constant dense<0.000000e+00> : vector<16x128xf32>
    %44 = tpu.matmul %43, %21, %cst_13 {dimension_numbers = #tpu.dot_dimension_numbers<[1], [0], [0], [1], [0, 0, 1, 1], [], []>} : vector<16x8xf32>, vector<8x128xf32>, vector<16x128xf32> -> vector<16x128xf32>
    %45 = arith.addf %42, %44 : vector<16x128xf32>
    %46 = vector.extract_strided_slice %40 {offsets = [32, 0], sizes = [16, 8], strides = [1, 1]} : vector<48x8xf32> to vector<16x8xf32>
    %cst_14 = arith.constant dense<0.000000e+00> : vector<16x128xf32>
    %47 = tpu.matmul %46, %39, %cst_14 {dimension_numbers = #tpu.dot_dimension_numbers<[1], [0], [0], [1], [0, 0, 1, 1], [], []>} : vector<16x8xf32>, vector<8x128xf32>, vector<16x128xf32> -> vector<16x128xf32>
    %48 = arith.addf %45, %47 : vector<16x128xf32>
    %c0_15 = arith.constant 0 : index
    %c0_16 = arith.constant 0 : index
    %49 = vector.load %arg4[%c0_15, %c0_16] : memref<16x1xf32, #tpu.memory_space<vmem>>, vector<16x1xf32>
    %50 = vector.broadcast %49 : vector<16x1xf32> to vector<16x128xf32>
    %51 = arith.addf %48, %50 : vector<16x128xf32>
    %cst_17 = arith.constant 0.000000e+00 : f32
    %52 = vector.broadcast %cst_17 : f32 to vector<16x128xf32>
    %53 = arith.maximumf %51, %52 : vector<16x128xf32>
    %c0_18 = arith.constant 0 : index
    %c0_19 = arith.constant 0 : index
    %54 = vector.load %arg5[%c0_18, %c0_19] : memref<32x8xf32, #tpu.memory_space<vmem>>, vector<32x8xf32>
    %cst_20 = arith.constant dense<0.000000e+00> : vector<32x128xf32>
    %55 = tpu.matmul %54, %23, %cst_20 {dimension_numbers = #tpu.dot_dimension_numbers<[1], [0], [0], [1], [0, 0, 1, 1], [], []>} : vector<32x8xf32>, vector<8x128xf32>, vector<32x128xf32> -> vector<32x128xf32>
    %c0_21 = arith.constant 0 : index
    %c0_22 = arith.constant 0 : index
    %56 = vector.load %arg6[%c0_21, %c0_22] : memref<32x1xf32, #tpu.memory_space<vmem>>, vector<32x1xf32>
    %57 = vector.broadcast %56 : vector<32x1xf32> to vector<32x128xf32>
    %58 = arith.addf %55, %57 : vector<32x128xf32>
    %59 = vector.extract_strided_slice %58 {offsets = [0, 0], sizes = [16, 128], strides = [1, 1]} : vector<32x128xf32> to vector<16x128xf32>
    %60 = arith.mulf %53, %59 : vector<16x128xf32>
    %61 = vector.extract_strided_slice %58 {offsets = [16, 0], sizes = [16, 128], strides = [1, 1]} : vector<32x128xf32> to vector<16x128xf32>
    %62 = arith.addf %60, %61 : vector<16x128xf32>
    %cst_23 = arith.constant 0.000000e+00 : f32
    %63 = vector.broadcast %cst_23 : f32 to vector<16x1xf32>
    %64 = vector.extract_strided_slice %62 {offsets = [0, 0], sizes = [16, 127], strides = [1, 1]} : vector<16x128xf32> to vector<16x127xf32>
    %65 = tpu.concatenate %63, %64 in 1 : vector<16x1xf32>, vector<16x127xf32> -> vector<16x128xf32>
    %c0_i32_24 = arith.constant 0 : i32
    %66 = arith.sitofp %c0_i32_24 : i32 to f32
    %67 = vector.shape_cast %18 : vector<1x128xi1> to vector<1x128xi1>
    %68 = vector.broadcast %67 : vector<1x128xi1> to vector<16x128xi1>
    %69 = vector.broadcast %66 : f32 to vector<16x128xf32>
    %70 = arith.select %68, %65, %69 : vector<16x128xi1>, vector<16x128xf32>
    %cst_25 = arith.constant 0.000000e+00 : f32
    %71 = vector.broadcast %cst_25 : f32 to vector<16x1xf32>
    %72 = vector.extract_strided_slice %62 {offsets = [0, 1], sizes = [16, 127], strides = [1, 1]} : vector<16x128xf32> to vector<16x127xf32>
    %73 = tpu.concatenate %72, %71 in 1 : vector<16x127xf32>, vector<16x1xf32> -> vector<16x128xf32>
    %c0_i32_26 = arith.constant 0 : i32
    %74 = arith.sitofp %c0_i32_26 : i32 to f32
    %75 = vector.shape_cast %20 : vector<1x128xi1> to vector<1x128xi1>
    %76 = vector.broadcast %75 : vector<1x128xi1> to vector<16x128xi1>
    %77 = vector.broadcast %74 : f32 to vector<16x128xf32>
    %78 = arith.select %76, %73, %77 : vector<16x128xi1>, vector<16x128xf32>
    %c0_27 = arith.constant 0 : index
    %c0_28 = arith.constant 0 : index
    %79 = vector.load %arg7[%c0_27, %c0_28] : memref<48x16xf32, #tpu.memory_space<vmem>>, vector<48x16xf32>
    %80 = vector.extract_strided_slice %79 {offsets = [0, 0], sizes = [16, 16], strides = [1, 1]} : vector<48x16xf32> to vector<16x16xf32>
    %cst_29 = arith.constant dense<0.000000e+00> : vector<16x128xf32>
    %81 = tpu.matmul %80, %70, %cst_29 {dimension_numbers = #tpu.dot_dimension_numbers<[1], [0], [0], [1], [0, 0, 1, 1], [], []>} : vector<16x16xf32>, vector<16x128xf32>, vector<16x128xf32> -> vector<16x128xf32>
    %82 = vector.extract_strided_slice %79 {offsets = [16, 0], sizes = [16, 16], strides = [1, 1]} : vector<48x16xf32> to vector<16x16xf32>
    %cst_30 = arith.constant dense<0.000000e+00> : vector<16x128xf32>
    %83 = tpu.matmul %82, %62, %cst_30 {dimension_numbers = #tpu.dot_dimension_numbers<[1], [0], [0], [1], [0, 0, 1, 1], [], []>} : vector<16x16xf32>, vector<16x128xf32>, vector<16x128xf32> -> vector<16x128xf32>
    %84 = arith.addf %81, %83 : vector<16x128xf32>
    %85 = vector.extract_strided_slice %79 {offsets = [32, 0], sizes = [16, 16], strides = [1, 1]} : vector<48x16xf32> to vector<16x16xf32>
    %cst_31 = arith.constant dense<0.000000e+00> : vector<16x128xf32>
    %86 = tpu.matmul %85, %78, %cst_31 {dimension_numbers = #tpu.dot_dimension_numbers<[1], [0], [0], [1], [0, 0, 1, 1], [], []>} : vector<16x16xf32>, vector<16x128xf32>, vector<16x128xf32> -> vector<16x128xf32>
    %87 = arith.addf %84, %86 : vector<16x128xf32>
    %c0_32 = arith.constant 0 : index
    %c0_33 = arith.constant 0 : index
    %88 = vector.load %arg8[%c0_32, %c0_33] : memref<16x1xf32, #tpu.memory_space<vmem>>, vector<16x1xf32>
    %89 = vector.broadcast %88 : vector<16x1xf32> to vector<16x128xf32>
    %90 = arith.addf %87, %89 : vector<16x128xf32>
    %cst_34 = arith.constant 0.000000e+00 : f32
    %91 = vector.broadcast %cst_34 : f32 to vector<16x128xf32>
    %92 = arith.maximumf %90, %91 : vector<16x128xf32>
    %c0_35 = arith.constant 0 : index
    %c0_36 = arith.constant 0 : index
    %93 = vector.load %arg9[%c0_35, %c0_36] : memref<32x8xf32, #tpu.memory_space<vmem>>, vector<32x8xf32>
    %cst_37 = arith.constant dense<0.000000e+00> : vector<32x128xf32>
    %94 = tpu.matmul %93, %23, %cst_37 {dimension_numbers = #tpu.dot_dimension_numbers<[1], [0], [0], [1], [0, 0, 1, 1], [], []>} : vector<32x8xf32>, vector<8x128xf32>, vector<32x128xf32> -> vector<32x128xf32>
    %c0_38 = arith.constant 0 : index
    %c0_39 = arith.constant 0 : index
    %95 = vector.load %arg10[%c0_38, %c0_39] : memref<32x1xf32, #tpu.memory_space<vmem>>, vector<32x1xf32>
    %96 = vector.broadcast %95 : vector<32x1xf32> to vector<32x128xf32>
    %97 = arith.addf %94, %96 : vector<32x128xf32>
    %98 = vector.extract_strided_slice %97 {offsets = [0, 0], sizes = [16, 128], strides = [1, 1]} : vector<32x128xf32> to vector<16x128xf32>
    %99 = arith.mulf %92, %98 : vector<16x128xf32>
    %100 = vector.extract_strided_slice %97 {offsets = [16, 0], sizes = [16, 128], strides = [1, 1]} : vector<32x128xf32> to vector<16x128xf32>
    %101 = arith.addf %99, %100 : vector<16x128xf32>
    %c0_40 = arith.constant 0 : index
    %c0_41 = arith.constant 0 : index
    %102 = vector.load %arg11[%c0_40, %c0_41] : memref<8x16xf32, #tpu.memory_space<vmem>>, vector<8x16xf32>
    %cst_42 = arith.constant dense<0.000000e+00> : vector<8x128xf32>
    %103 = tpu.matmul %102, %101, %cst_42 {dimension_numbers = #tpu.dot_dimension_numbers<[1], [0], [0], [1], [0, 0, 1, 1], [], []>} : vector<8x16xf32>, vector<16x128xf32>, vector<8x128xf32> -> vector<8x128xf32>
    %c0_43 = arith.constant 0 : index
    %c0_44 = arith.constant 0 : index
    %104 = vector.load %arg12[%c0_43, %c0_44] : memref<8x1xf32, #tpu.memory_space<vmem>>, vector<8x1xf32>
    %105 = vector.broadcast %104 : vector<8x1xf32> to vector<8x128xf32>
    %106 = arith.addf %103, %105 : vector<8x128xf32>
    %c0_45 = arith.constant 0 : index
    %c0_46 = arith.constant 0 : index
    %107 = vector.load %arg13[%c0_45, %c0_46] : memref<8x128xf32, #tpu.memory_space<vmem>>, vector<8x128xf32>
    tpu.vector_store %arg13[%c0_45, %c0_46], %106 {strides = array<i32>} : memref<8x128xf32, #tpu.memory_space<vmem>>, vector<8x128xf32>,
    return
  }
  func.func @transform_0(%arg0: i32) -> (i32, i32) {
    %c0_i32 = arith.constant 0 : i32
    %c0_i32_0 = arith.constant 0 : i32
    return %c0_i32, %arg0 : i32, i32
  }
  func.func @transform_1(%arg0: i32) -> (i32, i32) {
    %c0_i32 = arith.constant 0 : i32
    %c0_i32_0 = arith.constant 0 : i32
    return %c0_i32, %arg0 : i32, i32
  }
  func.func @transform_2(%arg0: i32) -> (i32, i32) {
    %c0_i32 = arith.constant 0 : i32
    %c0_i32_0 = arith.constant 0 : i32
    %c0_i32_1 = arith.constant 0 : i32
    return %c0_i32, %c0_i32_0 : i32, i32
  }
  func.func @transform_3(%arg0: i32) -> (i32, i32) {
    %c0_i32 = arith.constant 0 : i32
    %c0_i32_0 = arith.constant 0 : i32
    %c0_i32_1 = arith.constant 0 : i32
    return %c0_i32, %c0_i32_0 : i32, i32
  }
  func.func @transform_4(%arg0: i32) -> (i32, i32) {
    %c0_i32 = arith.constant 0 : i32
    %c0_i32_0 = arith.constant 0 : i32
    %c0_i32_1 = arith.constant 0 : i32
    return %c0_i32, %c0_i32_0 : i32, i32
  }
  func.func @transform_5(%arg0: i32) -> (i32, i32) {
    %c0_i32 = arith.constant 0 : i32
    %c0_i32_0 = arith.constant 0 : i32
    %c0_i32_1 = arith.constant 0 : i32
    return %c0_i32, %c0_i32_0 : i32, i32
  }
  func.func @transform_6(%arg0: i32) -> (i32, i32) {
    %c0_i32 = arith.constant 0 : i32
    %c0_i32_0 = arith.constant 0 : i32
    %c0_i32_1 = arith.constant 0 : i32
    return %c0_i32, %c0_i32_0 : i32, i32
  }
  func.func @transform_7(%arg0: i32) -> (i32, i32) {
    %c0_i32 = arith.constant 0 : i32
    %c0_i32_0 = arith.constant 0 : i32
    %c0_i32_1 = arith.constant 0 : i32
    return %c0_i32, %c0_i32_0 : i32, i32
  }
  func.func @transform_8(%arg0: i32) -> (i32, i32) {
    %c0_i32 = arith.constant 0 : i32
    %c0_i32_0 = arith.constant 0 : i32
    %c0_i32_1 = arith.constant 0 : i32
    return %c0_i32, %c0_i32_0 : i32, i32
  }
  func.func @transform_9(%arg0: i32) -> (i32, i32) {
    %c0_i32 = arith.constant 0 : i32
    %c0_i32_0 = arith.constant 0 : i32
    %c0_i32_1 = arith.constant 0 : i32
    return %c0_i32, %c0_i32_0 : i32, i32
  }
  func.func @transform_10(%arg0: i32) -> (i32, i32) {
    %c0_i32 = arith.constant 0 : i32
    %c0_i32_0 = arith.constant 0 : i32
    %c0_i32_1 = arith.constant 0 : i32
    return %c0_i32, %c0_i32_0 : i32, i32
  }
  func.func @transform_11(%arg0: i32) -> (i32, i32) {
    %c0_i32 = arith.constant 0 : i32
    %c0_i32_0 = arith.constant 0 : i32
    %c0_i32_1 = arith.constant 0 : i32
    return %c0_i32, %c0_i32_0 : i32, i32
  }
  func.func @transform_12(%arg0: i32) -> (i32, i32) {
    %c0_i32 = arith.constant 0 : i32
    %c0_i32_0 = arith.constant 0 : i32
    return %c0_i32, %arg0 : i32, i32
  }
}

module attributes {stable_mosaic.version = 11 : i64} {
  func.func @kernel(%arg0: i32, %arg1: memref<8x128xf32, #tpu.memory_space<vmem>>, %arg2: memref<8x128xf32, #tpu.memory_space<vmem>>, %arg3: memref<48x8xf32, #tpu.memory_space<vmem>>, %arg4: memref<16x1xf32, #tpu.memory_space<vmem>>, %arg5: memref<32x8xf32, #tpu.memory_space<vmem>>, %arg6: memref<32x1xf32, #tpu.memory_space<vmem>>, %arg7: memref<8x16xf32, #tpu.memory_space<vmem>>, %arg8: memref<8x1xf32, #tpu.memory_space<vmem>>, %arg9: memref<48x8xf32, #tpu.memory_space<vmem>>, %arg10: memref<16x1xf32, #tpu.memory_space<vmem>>, %arg11: memref<32x8xf32, #tpu.memory_space<vmem>>, %arg12: memref<32x1xf32, #tpu.memory_space<vmem>>, %arg13: memref<16x16xf32, #tpu.memory_space<vmem>>, %arg14: memref<16x1xf32, #tpu.memory_space<vmem>>, %arg15: memref<8x128xf32, #tpu.memory_space<vmem>>, %arg16: memref<16x128xf32, #tpu.memory_space<vmem>>) attributes {dimension_semantics = [#tpu.dimension_semantics<parallel>], iteration_bounds = array<i64: 1>, scalar_prefetch = 0 : i64, scratch_operands = 0 : i64, tpu.core_type = #tpu.core_type<tc>, window_params = [{transform_indices = @transform_0, window_bounds = array<i64: 8, 128>}, {transform_indices = @transform_1, window_bounds = array<i64: 8, 128>}, {pipeline_mode = #tpu.pipeline_mode<synchronous>, transform_indices = @transform_2, window_bounds = array<i64: 48, 8>}, {pipeline_mode = #tpu.pipeline_mode<synchronous>, transform_indices = @transform_3, window_bounds = array<i64: 16, 1>}, {pipeline_mode = #tpu.pipeline_mode<synchronous>, transform_indices = @transform_4, window_bounds = array<i64: 32, 8>}, {pipeline_mode = #tpu.pipeline_mode<synchronous>, transform_indices = @transform_5, window_bounds = array<i64: 32, 1>}, {pipeline_mode = #tpu.pipeline_mode<synchronous>, transform_indices = @transform_6, window_bounds = array<i64: 8, 16>}, {pipeline_mode = #tpu.pipeline_mode<synchronous>, transform_indices = @transform_7, window_bounds = array<i64: 8, 1>}, {pipeline_mode = #tpu.pipeline_mode<synchronous>, transform_indices = @transform_8, window_bounds = array<i64: 48, 8>}, {pipeline_mode = #tpu.pipeline_mode<synchronous>, transform_indices = @transform_9, window_bounds = array<i64: 16, 1>}, {pipeline_mode = #tpu.pipeline_mode<synchronous>, transform_indices = @transform_10, window_bounds = array<i64: 32, 8>}, {pipeline_mode = #tpu.pipeline_mode<synchronous>, transform_indices = @transform_11, window_bounds = array<i64: 32, 1>}, {pipeline_mode = #tpu.pipeline_mode<synchronous>, transform_indices = @transform_12, window_bounds = array<i64: 16, 16>}, {pipeline_mode = #tpu.pipeline_mode<synchronous>, transform_indices = @transform_13, window_bounds = array<i64: 16, 1>}, {transform_indices = @transform_14, window_bounds = array<i64: 8, 128>}, {transform_indices = @transform_15, window_bounds = array<i64: 16, 128>}]} {
    %0 = tpu.iota {dimensions = array<i32: 1>} : vector<1x128xi32>
    %c16_i32 = arith.constant 16 : i32
    %c0_i32 = arith.constant 0 : i32
    %1 = arith.cmpi eq, %c16_i32, %c0_i32 : i32
    %c1_i32 = arith.constant 1 : i32
    %2 = arith.select %1, %c1_i32, %c16_i32 : i32
    %3 = vector.broadcast %2 : i32 to vector<1x128xi32>
    %4 = arith.remsi %0, %3 : vector<1x128xi32>
    %c0_i32_0 = arith.constant 0 : i32
    %5 = vector.broadcast %c0_i32_0 : i32 to vector<1x128xi32>
    %6 = arith.cmpi ne, %4, %5 : vector<1x128xi32>
    %c0_i32_1 = arith.constant 0 : i32
    %7 = vector.broadcast %c0_i32_1 : i32 to vector<1x128xi32>
    %8 = arith.cmpi slt, %4, %7 : vector<1x128xi32>
    %c0_i32_2 = arith.constant 0 : i32
    %9 = arith.cmpi slt, %2, %c0_i32_2 : i32
    %10 = vector.broadcast %9 : i1 to vector<1x128xi1>
    %11 = vector.broadcast %10 : vector<1x128xi1> to vector<1x128xi1>
    %12 = arith.xori %8, %11 : vector<1x128xi1>
    %13 = arith.andi %12, %6 : vector<1x128xi1>
    %14 = vector.broadcast %2 : i32 to vector<1x128xi32>
    %15 = arith.addi %4, %14 : vector<1x128xi32>
    %16 = arith.select %13, %15, %4 : vector<1x128xi1>, vector<1x128xi32>
    %c0_i32_3 = arith.constant 0 : i32
    %17 = vector.broadcast %c0_i32_3 : i32 to vector<1x128xi32>
    %18 = arith.cmpi ne, %16, %17 : vector<1x128xi32>
    %c15_i32 = arith.constant 15 : i32
    %19 = vector.broadcast %c15_i32 : i32 to vector<1x128xi32>
    %20 = arith.cmpi ne, %16, %19 : vector<1x128xi32>
    %c0 = arith.constant 0 : index
    %c0_4 = arith.constant 0 : index
    %21 = vector.load %arg1[%c0, %c0_4] : memref<8x128xf32, #tpu.memory_space<vmem>>, vector<8x128xf32>
    %c0_5 = arith.constant 0 : index
    %c0_6 = arith.constant 0 : index
    %22 = vector.load %arg2[%c0_5, %c0_6] : memref<8x128xf32, #tpu.memory_space<vmem>>, vector<8x128xf32>
    %23 = math.tanh %22 : vector<8x128xf32>
    %cst = arith.constant 0.000000e+00 : f32
    %24 = vector.broadcast %cst : f32 to vector<8x1xf32>
    %25 = vector.extract_strided_slice %21 {offsets = [0, 0], sizes = [8, 127], strides = [1, 1]} : vector<8x128xf32> to vector<8x127xf32>
    %26 = tpu.concatenate %24, %25 in 1 : vector<8x1xf32>, vector<8x127xf32> -> vector<8x128xf32>
    %c0_i32_7 = arith.constant 0 : i32
    %27 = arith.sitofp %c0_i32_7 : i32 to f32
    %28 = vector.shape_cast %18 : vector<1x128xi1> to vector<1x128xi1>
    %29 = vector.broadcast %28 : vector<1x128xi1> to vector<8x128xi1>
    %30 = vector.broadcast %27 : f32 to vector<8x128xf32>
    %31 = arith.select %29, %26, %30 : vector<8x128xi1>, vector<8x128xf32>
    %cst_8 = arith.constant 0.000000e+00 : f32
    %32 = vector.broadcast %cst_8 : f32 to vector<8x1xf32>
    %33 = vector.extract_strided_slice %21 {offsets = [0, 1], sizes = [8, 127], strides = [1, 1]} : vector<8x128xf32> to vector<8x127xf32>
    %34 = tpu.concatenate %33, %32 in 1 : vector<8x127xf32>, vector<8x1xf32> -> vector<8x128xf32>
    %c0_i32_9 = arith.constant 0 : i32
    %35 = arith.sitofp %c0_i32_9 : i32 to f32
    %36 = vector.shape_cast %20 : vector<1x128xi1> to vector<1x128xi1>
    %37 = vector.broadcast %36 : vector<1x128xi1> to vector<8x128xi1>
    %38 = vector.broadcast %35 : f32 to vector<8x128xf32>
    %39 = arith.select %37, %34, %38 : vector<8x128xi1>, vector<8x128xf32>
    %c0_10 = arith.constant 0 : index
    %c0_11 = arith.constant 0 : index
    %40 = vector.load %arg3[%c0_10, %c0_11] : memref<48x8xf32, #tpu.memory_space<vmem>>, vector<48x8xf32>
    %41 = vector.extract_strided_slice %40 {offsets = [0, 0], sizes = [16, 8], strides = [1, 1]} : vector<48x8xf32> to vector<16x8xf32>
    %cst_12 = arith.constant dense<0.000000e+00> : vector<16x128xf32>
    %42 = tpu.matmul %41, %31, %cst_12 {dimension_numbers = #tpu.dot_dimension_numbers<[1], [0], [0], [1], [0, 0, 1, 1], [], []>} : vector<16x8xf32>, vector<8x128xf32>, vector<16x128xf32> -> vector<16x128xf32>
    %43 = vector.extract_strided_slice %40 {offsets = [16, 0], sizes = [16, 8], strides = [1, 1]} : vector<48x8xf32> to vector<16x8xf32>
    %cst_13 = arith.constant dense<0.000000e+00> : vector<16x128xf32>
    %44 = tpu.matmul %43, %21, %cst_13 {dimension_numbers = #tpu.dot_dimension_numbers<[1], [0], [0], [1], [0, 0, 1, 1], [], []>} : vector<16x8xf32>, vector<8x128xf32>, vector<16x128xf32> -> vector<16x128xf32>
    %45 = arith.addf %42, %44 : vector<16x128xf32>
    %46 = vector.extract_strided_slice %40 {offsets = [32, 0], sizes = [16, 8], strides = [1, 1]} : vector<48x8xf32> to vector<16x8xf32>
    %cst_14 = arith.constant dense<0.000000e+00> : vector<16x128xf32>
    %47 = tpu.matmul %46, %39, %cst_14 {dimension_numbers = #tpu.dot_dimension_numbers<[1], [0], [0], [1], [0, 0, 1, 1], [], []>} : vector<16x8xf32>, vector<8x128xf32>, vector<16x128xf32> -> vector<16x128xf32>
    %48 = arith.addf %45, %47 : vector<16x128xf32>
    %c0_15 = arith.constant 0 : index
    %c0_16 = arith.constant 0 : index
    %49 = vector.load %arg4[%c0_15, %c0_16] : memref<16x1xf32, #tpu.memory_space<vmem>>, vector<16x1xf32>
    %50 = vector.broadcast %49 : vector<16x1xf32> to vector<16x128xf32>
    %51 = arith.addf %48, %50 : vector<16x128xf32>
    %cst_17 = arith.constant 0.000000e+00 : f32
    %52 = vector.broadcast %cst_17 : f32 to vector<16x128xf32>
    %53 = arith.maximumf %51, %52 : vector<16x128xf32>
    %c0_18 = arith.constant 0 : index
    %c0_19 = arith.constant 0 : index
    %54 = vector.load %arg5[%c0_18, %c0_19] : memref<32x8xf32, #tpu.memory_space<vmem>>, vector<32x8xf32>
    %cst_20 = arith.constant dense<0.000000e+00> : vector<32x128xf32>
    %55 = tpu.matmul %54, %23, %cst_20 {dimension_numbers = #tpu.dot_dimension_numbers<[1], [0], [0], [1], [0, 0, 1, 1], [], []>} : vector<32x8xf32>, vector<8x128xf32>, vector<32x128xf32> -> vector<32x128xf32>
    %c0_21 = arith.constant 0 : index
    %c0_22 = arith.constant 0 : index
    %56 = vector.load %arg6[%c0_21, %c0_22] : memref<32x1xf32, #tpu.memory_space<vmem>>, vector<32x1xf32>
    %57 = vector.broadcast %56 : vector<32x1xf32> to vector<32x128xf32>
    %58 = arith.addf %55, %57 : vector<32x128xf32>
    %59 = vector.extract_strided_slice %58 {offsets = [0, 0], sizes = [16, 128], strides = [1, 1]} : vector<32x128xf32> to vector<16x128xf32>
    %60 = arith.mulf %53, %59 : vector<16x128xf32>
    %61 = vector.extract_strided_slice %58 {offsets = [16, 0], sizes = [16, 128], strides = [1, 1]} : vector<32x128xf32> to vector<16x128xf32>
    %62 = arith.addf %60, %61 : vector<16x128xf32>
    %c0_23 = arith.constant 0 : index
    %c0_24 = arith.constant 0 : index
    %63 = vector.load %arg7[%c0_23, %c0_24] : memref<8x16xf32, #tpu.memory_space<vmem>>, vector<8x16xf32>
    %cst_25 = arith.constant dense<0.000000e+00> : vector<8x128xf32>
    %64 = tpu.matmul %63, %62, %cst_25 {dimension_numbers = #tpu.dot_dimension_numbers<[1], [0], [0], [1], [0, 0, 1, 1], [], []>} : vector<8x16xf32>, vector<16x128xf32>, vector<8x128xf32> -> vector<8x128xf32>
    %c0_26 = arith.constant 0 : index
    %c0_27 = arith.constant 0 : index
    %65 = vector.load %arg8[%c0_26, %c0_27] : memref<8x1xf32, #tpu.memory_space<vmem>>, vector<8x1xf32>
    %66 = vector.broadcast %65 : vector<8x1xf32> to vector<8x128xf32>
    %67 = arith.addf %64, %66 : vector<8x128xf32>
    %cst_28 = arith.constant 0.000000e+00 : f32
    %68 = vector.broadcast %cst_28 : f32 to vector<8x128xf32>
    %69 = arith.subf %68, %67 : vector<8x128xf32>
    %70 = math.exp %69 : vector<8x128xf32>
    %cst_29 = arith.constant 1.000000e+00 : f32
    %71 = vector.broadcast %cst_29 : f32 to vector<8x128xf32>
    %72 = arith.addf %71, %70 : vector<8x128xf32>
    %cst_30 = arith.constant 1.000000e+00 : f32
    %73 = vector.broadcast %cst_30 : f32 to vector<8x128xf32>
    %74 = arith.divf %73, %72 : vector<8x128xf32>
    %c0_31 = arith.constant 0 : index
    %c0_32 = arith.constant 0 : index
    %75 = vector.load %arg15[%c0_31, %c0_32] : memref<8x128xf32, #tpu.memory_space<vmem>>, vector<8x128xf32>
    tpu.vector_store %arg15[%c0_31, %c0_32], %74 {strides = array<i32>} : memref<8x128xf32, #tpu.memory_space<vmem>>, vector<8x128xf32>,
    %cst_33 = arith.constant 0.000000e+00 : f32
    %76 = vector.broadcast %cst_33 : f32 to vector<8x1xf32>
    %77 = vector.extract_strided_slice %21 {offsets = [0, 0], sizes = [8, 127], strides = [1, 1]} : vector<8x128xf32> to vector<8x127xf32>
    %78 = tpu.concatenate %76, %77 in 1 : vector<8x1xf32>, vector<8x127xf32> -> vector<8x128xf32>
    %c0_i32_34 = arith.constant 0 : i32
    %79 = arith.sitofp %c0_i32_34 : i32 to f32
    %80 = vector.shape_cast %18 : vector<1x128xi1> to vector<1x128xi1>
    %81 = vector.broadcast %80 : vector<1x128xi1> to vector<8x128xi1>
    %82 = vector.broadcast %79 : f32 to vector<8x128xf32>
    %83 = arith.select %81, %78, %82 : vector<8x128xi1>, vector<8x128xf32>
    %cst_35 = arith.constant 0.000000e+00 : f32
    %84 = vector.broadcast %cst_35 : f32 to vector<8x1xf32>
    %85 = vector.extract_strided_slice %21 {offsets = [0, 1], sizes = [8, 127], strides = [1, 1]} : vector<8x128xf32> to vector<8x127xf32>
    %86 = tpu.concatenate %85, %84 in 1 : vector<8x127xf32>, vector<8x1xf32> -> vector<8x128xf32>
    %c0_i32_36 = arith.constant 0 : i32
    %87 = arith.sitofp %c0_i32_36 : i32 to f32
    %88 = vector.shape_cast %20 : vector<1x128xi1> to vector<1x128xi1>
    %89 = vector.broadcast %88 : vector<1x128xi1> to vector<8x128xi1>
    %90 = vector.broadcast %87 : f32 to vector<8x128xf32>
    %91 = arith.select %89, %86, %90 : vector<8x128xi1>, vector<8x128xf32>
    %c0_37 = arith.constant 0 : index
    %c0_38 = arith.constant 0 : index
    %92 = vector.load %arg9[%c0_37, %c0_38] : memref<48x8xf32, #tpu.memory_space<vmem>>, vector<48x8xf32>
    %93 = vector.extract_strided_slice %92 {offsets = [0, 0], sizes = [16, 8], strides = [1, 1]} : vector<48x8xf32> to vector<16x8xf32>
    %cst_39 = arith.constant dense<0.000000e+00> : vector<16x128xf32>
    %94 = tpu.matmul %93, %83, %cst_39 {dimension_numbers = #tpu.dot_dimension_numbers<[1], [0], [0], [1], [0, 0, 1, 1], [], []>} : vector<16x8xf32>, vector<8x128xf32>, vector<16x128xf32> -> vector<16x128xf32>
    %95 = vector.extract_strided_slice %92 {offsets = [16, 0], sizes = [16, 8], strides = [1, 1]} : vector<48x8xf32> to vector<16x8xf32>
    %cst_40 = arith.constant dense<0.000000e+00> : vector<16x128xf32>
    %96 = tpu.matmul %95, %21, %cst_40 {dimension_numbers = #tpu.dot_dimension_numbers<[1], [0], [0], [1], [0, 0, 1, 1], [], []>} : vector<16x8xf32>, vector<8x128xf32>, vector<16x128xf32> -> vector<16x128xf32>
    %97 = arith.addf %94, %96 : vector<16x128xf32>
    %98 = vector.extract_strided_slice %92 {offsets = [32, 0], sizes = [16, 8], strides = [1, 1]} : vector<48x8xf32> to vector<16x8xf32>
    %cst_41 = arith.constant dense<0.000000e+00> : vector<16x128xf32>
    %99 = tpu.matmul %98, %91, %cst_41 {dimension_numbers = #tpu.dot_dimension_numbers<[1], [0], [0], [1], [0, 0, 1, 1], [], []>} : vector<16x8xf32>, vector<8x128xf32>, vector<16x128xf32> -> vector<16x128xf32>
    %100 = arith.addf %97, %99 : vector<16x128xf32>
    %c0_42 = arith.constant 0 : index
    %c0_43 = arith.constant 0 : index
    %101 = vector.load %arg10[%c0_42, %c0_43] : memref<16x1xf32, #tpu.memory_space<vmem>>, vector<16x1xf32>
    %102 = vector.broadcast %101 : vector<16x1xf32> to vector<16x128xf32>
    %103 = arith.addf %100, %102 : vector<16x128xf32>
    %cst_44 = arith.constant 0.000000e+00 : f32
    %104 = vector.broadcast %cst_44 : f32 to vector<16x128xf32>
    %105 = arith.maximumf %103, %104 : vector<16x128xf32>
    %c0_45 = arith.constant 0 : index
    %c0_46 = arith.constant 0 : index
    %106 = vector.load %arg11[%c0_45, %c0_46] : memref<32x8xf32, #tpu.memory_space<vmem>>, vector<32x8xf32>
    %cst_47 = arith.constant dense<0.000000e+00> : vector<32x128xf32>
    %107 = tpu.matmul %106, %23, %cst_47 {dimension_numbers = #tpu.dot_dimension_numbers<[1], [0], [0], [1], [0, 0, 1, 1], [], []>} : vector<32x8xf32>, vector<8x128xf32>, vector<32x128xf32> -> vector<32x128xf32>
    %c0_48 = arith.constant 0 : index
    %c0_49 = arith.constant 0 : index
    %108 = vector.load %arg12[%c0_48, %c0_49] : memref<32x1xf32, #tpu.memory_space<vmem>>, vector<32x1xf32>
    %109 = vector.broadcast %108 : vector<32x1xf32> to vector<32x128xf32>
    %110 = arith.addf %107, %109 : vector<32x128xf32>
    %111 = vector.extract_strided_slice %110 {offsets = [0, 0], sizes = [16, 128], strides = [1, 1]} : vector<32x128xf32> to vector<16x128xf32>
    %112 = arith.mulf %105, %111 : vector<16x128xf32>
    %113 = vector.extract_strided_slice %110 {offsets = [16, 0], sizes = [16, 128], strides = [1, 1]} : vector<32x128xf32> to vector<16x128xf32>
    %114 = arith.addf %112, %113 : vector<16x128xf32>
    %c0_50 = arith.constant 0 : index
    %c0_51 = arith.constant 0 : index
    %115 = vector.load %arg13[%c0_50, %c0_51] : memref<16x16xf32, #tpu.memory_space<vmem>>, vector<16x16xf32>
    %cst_52 = arith.constant dense<0.000000e+00> : vector<16x128xf32>
    %116 = tpu.matmul %115, %114, %cst_52 {dimension_numbers = #tpu.dot_dimension_numbers<[1], [0], [0], [1], [0, 0, 1, 1], [], []>} : vector<16x16xf32>, vector<16x128xf32>, vector<16x128xf32> -> vector<16x128xf32>
    %c0_53 = arith.constant 0 : index
    %c0_54 = arith.constant 0 : index
    %117 = vector.load %arg14[%c0_53, %c0_54] : memref<16x1xf32, #tpu.memory_space<vmem>>, vector<16x1xf32>
    %118 = vector.broadcast %117 : vector<16x1xf32> to vector<16x128xf32>
    %119 = arith.addf %116, %118 : vector<16x128xf32>
    %c0_55 = arith.constant 0 : index
    %c0_56 = arith.constant 0 : index
    %120 = vector.load %arg16[%c0_55, %c0_56] : memref<16x128xf32, #tpu.memory_space<vmem>>, vector<16x128xf32>
    tpu.vector_store %arg16[%c0_55, %c0_56], %119 {strides = array<i32>} : memref<16x128xf32, #tpu.memory_space<vmem>>, vector<16x128xf32>,
    return
  }
  func.func @transform_0(%arg0: i32) -> (i32, i32) {
    %c0_i32 = arith.constant 0 : i32
    %c0_i32_0 = arith.constant 0 : i32
    return %c0_i32, %arg0 : i32, i32
  }
  func.func @transform_1(%arg0: i32) -> (i32, i32) {
    %c0_i32 = arith.constant 0 : i32
    %c0_i32_0 = arith.constant 0 : i32
    return %c0_i32, %arg0 : i32, i32
  }
  func.func @transform_2(%arg0: i32) -> (i32, i32) {
    %c0_i32 = arith.constant 0 : i32
    %c0_i32_0 = arith.constant 0 : i32
    %c0_i32_1 = arith.constant 0 : i32
    return %c0_i32, %c0_i32_0 : i32, i32
  }
  func.func @transform_3(%arg0: i32) -> (i32, i32) {
    %c0_i32 = arith.constant 0 : i32
    %c0_i32_0 = arith.constant 0 : i32
    %c0_i32_1 = arith.constant 0 : i32
    return %c0_i32, %c0_i32_0 : i32, i32
  }
  func.func @transform_4(%arg0: i32) -> (i32, i32) {
    %c0_i32 = arith.constant 0 : i32
    %c0_i32_0 = arith.constant 0 : i32
    %c0_i32_1 = arith.constant 0 : i32
    return %c0_i32, %c0_i32_0 : i32, i32
  }
  func.func @transform_5(%arg0: i32) -> (i32, i32) {
    %c0_i32 = arith.constant 0 : i32
    %c0_i32_0 = arith.constant 0 : i32
    %c0_i32_1 = arith.constant 0 : i32
    return %c0_i32, %c0_i32_0 : i32, i32
  }
  func.func @transform_6(%arg0: i32) -> (i32, i32) {
    %c0_i32 = arith.constant 0 : i32
    %c0_i32_0 = arith.constant 0 : i32
    %c0_i32_1 = arith.constant 0 : i32
    return %c0_i32, %c0_i32_0 : i32, i32
  }
  func.func @transform_7(%arg0: i32) -> (i32, i32) {
    %c0_i32 = arith.constant 0 : i32
    %c0_i32_0 = arith.constant 0 : i32
    %c0_i32_1 = arith.constant 0 : i32
    return %c0_i32, %c0_i32_0 : i32, i32
  }
  func.func @transform_8(%arg0: i32) -> (i32, i32) {
    %c0_i32 = arith.constant 0 : i32
    %c0_i32_0 = arith.constant 0 : i32
    %c0_i32_1 = arith.constant 0 : i32
    return %c0_i32, %c0_i32_0 : i32, i32
  }
  func.func @transform_9(%arg0: i32) -> (i32, i32) {
    %c0_i32 = arith.constant 0 : i32
    %c0_i32_0 = arith.constant 0 : i32
    %c0_i32_1 = arith.constant 0 : i32
    return %c0_i32, %c0_i32_0 : i32, i32
  }
  func.func @transform_10(%arg0: i32) -> (i32, i32) {
    %c0_i32 = arith.constant 0 : i32
    %c0_i32_0 = arith.constant 0 : i32
    %c0_i32_1 = arith.constant 0 : i32
    return %c0_i32, %c0_i32_0 : i32, i32
  }
  func.func @transform_11(%arg0: i32) -> (i32, i32) {
    %c0_i32 = arith.constant 0 : i32
    %c0_i32_0 = arith.constant 0 : i32
    %c0_i32_1 = arith.constant 0 : i32
    return %c0_i32, %c0_i32_0 : i32, i32
  }
  func.func @transform_12(%arg0: i32) -> (i32, i32) {
    %c0_i32 = arith.constant 0 : i32
    %c0_i32_0 = arith.constant 0 : i32
    %c0_i32_1 = arith.constant 0 : i32
    return %c0_i32, %c0_i32_0 : i32, i32
  }
  func.func @transform_13(%arg0: i32) -> (i32, i32) {
    %c0_i32 = arith.constant 0 : i32
    %c0_i32_0 = arith.constant 0 : i32
    %c0_i32_1 = arith.constant 0 : i32
    return %c0_i32, %c0_i32_0 : i32, i32
  }
  func.func @transform_14(%arg0: i32) -> (i32, i32) {
    %c0_i32 = arith.constant 0 : i32
    %c0_i32_0 = arith.constant 0 : i32
    return %c0_i32, %arg0 : i32, i32
  }
  func.func @transform_15(%arg0: i32) -> (i32, i32) {
    %c0_i32 = arith.constant 0 : i32
    %c0_i32_0 = arith.constant 0 : i32
    return %c0_i32, %arg0 : i32, i32
  }
}

module attributes {stable_mosaic.version = 11 : i64} {
  func.func @kernel(%arg0: i32, %arg1: memref<16x128xf32, #tpu.memory_space<vmem>>, %arg2: memref<8x128xf32, #tpu.memory_space<vmem>>, %arg3: memref<48x16xf32, #tpu.memory_space<vmem>>, %arg4: memref<16x1xf32, #tpu.memory_space<vmem>>, %arg5: memref<32x8xf32, #tpu.memory_space<vmem>>, %arg6: memref<32x1xf32, #tpu.memory_space<vmem>>, %arg7: memref<8x16xf32, #tpu.memory_space<vmem>>, %arg8: memref<8x1xf32, #tpu.memory_space<vmem>>, %arg9: memref<48x16xf32, #tpu.memory_space<vmem>>, %arg10: memref<16x1xf32, #tpu.memory_space<vmem>>, %arg11: memref<32x8xf32, #tpu.memory_space<vmem>>, %arg12: memref<32x1xf32, #tpu.memory_space<vmem>>, %arg13: memref<8x16xf32, #tpu.memory_space<vmem>>, %arg14: memref<8x1xf32, #tpu.memory_space<vmem>>, %arg15: memref<8x128xf32, #tpu.memory_space<vmem>>, %arg16: memref<8x128xf32, #tpu.memory_space<vmem>>) attributes {dimension_semantics = [#tpu.dimension_semantics<parallel>], iteration_bounds = array<i64: 1>, scalar_prefetch = 0 : i64, scratch_operands = 0 : i64, tpu.core_type = #tpu.core_type<tc>, window_params = [{transform_indices = @transform_0, window_bounds = array<i64: 16, 128>}, {transform_indices = @transform_1, window_bounds = array<i64: 8, 128>}, {pipeline_mode = #tpu.pipeline_mode<synchronous>, transform_indices = @transform_2, window_bounds = array<i64: 48, 16>}, {pipeline_mode = #tpu.pipeline_mode<synchronous>, transform_indices = @transform_3, window_bounds = array<i64: 16, 1>}, {pipeline_mode = #tpu.pipeline_mode<synchronous>, transform_indices = @transform_4, window_bounds = array<i64: 32, 8>}, {pipeline_mode = #tpu.pipeline_mode<synchronous>, transform_indices = @transform_5, window_bounds = array<i64: 32, 1>}, {pipeline_mode = #tpu.pipeline_mode<synchronous>, transform_indices = @transform_6, window_bounds = array<i64: 8, 16>}, {pipeline_mode = #tpu.pipeline_mode<synchronous>, transform_indices = @transform_7, window_bounds = array<i64: 8, 1>}, {pipeline_mode = #tpu.pipeline_mode<synchronous>, transform_indices = @transform_8, window_bounds = array<i64: 48, 16>}, {pipeline_mode = #tpu.pipeline_mode<synchronous>, transform_indices = @transform_9, window_bounds = array<i64: 16, 1>}, {pipeline_mode = #tpu.pipeline_mode<synchronous>, transform_indices = @transform_10, window_bounds = array<i64: 32, 8>}, {pipeline_mode = #tpu.pipeline_mode<synchronous>, transform_indices = @transform_11, window_bounds = array<i64: 32, 1>}, {pipeline_mode = #tpu.pipeline_mode<synchronous>, transform_indices = @transform_12, window_bounds = array<i64: 8, 16>}, {pipeline_mode = #tpu.pipeline_mode<synchronous>, transform_indices = @transform_13, window_bounds = array<i64: 8, 1>}, {transform_indices = @transform_14, window_bounds = array<i64: 8, 128>}, {transform_indices = @transform_15, window_bounds = array<i64: 8, 128>}]} {
    %0 = tpu.iota {dimensions = array<i32: 1>} : vector<1x128xi32>
    %c16_i32 = arith.constant 16 : i32
    %c0_i32 = arith.constant 0 : i32
    %1 = arith.cmpi eq, %c16_i32, %c0_i32 : i32
    %c1_i32 = arith.constant 1 : i32
    %2 = arith.select %1, %c1_i32, %c16_i32 : i32
    %3 = vector.broadcast %2 : i32 to vector<1x128xi32>
    %4 = arith.remsi %0, %3 : vector<1x128xi32>
    %c0_i32_0 = arith.constant 0 : i32
    %5 = vector.broadcast %c0_i32_0 : i32 to vector<1x128xi32>
    %6 = arith.cmpi ne, %4, %5 : vector<1x128xi32>
    %c0_i32_1 = arith.constant 0 : i32
    %7 = vector.broadcast %c0_i32_1 : i32 to vector<1x128xi32>
    %8 = arith.cmpi slt, %4, %7 : vector<1x128xi32>
    %c0_i32_2 = arith.constant 0 : i32
    %9 = arith.cmpi slt, %2, %c0_i32_2 : i32
    %10 = vector.broadcast %9 : i1 to vector<1x128xi1>
    %11 = vector.broadcast %10 : vector<1x128xi1> to vector<1x128xi1>
    %12 = arith.xori %8, %11 : vector<1x128xi1>
    %13 = arith.andi %12, %6 : vector<1x128xi1>
    %14 = vector.broadcast %2 : i32 to vector<1x128xi32>
    %15 = arith.addi %4, %14 : vector<1x128xi32>
    %16 = arith.select %13, %15, %4 : vector<1x128xi1>, vector<1x128xi32>
    %c0_i32_3 = arith.constant 0 : i32
    %17 = vector.broadcast %c0_i32_3 : i32 to vector<1x128xi32>
    %18 = arith.cmpi ne, %16, %17 : vector<1x128xi32>
    %c15_i32 = arith.constant 15 : i32
    %19 = vector.broadcast %c15_i32 : i32 to vector<1x128xi32>
    %20 = arith.cmpi ne, %16, %19 : vector<1x128xi32>
    %c0 = arith.constant 0 : index
    %c0_4 = arith.constant 0 : index
    %21 = vector.load %arg1[%c0, %c0_4] : memref<16x128xf32, #tpu.memory_space<vmem>>, vector<16x128xf32>
    %c0_5 = arith.constant 0 : index
    %c0_6 = arith.constant 0 : index
    %22 = vector.load %arg2[%c0_5, %c0_6] : memref<8x128xf32, #tpu.memory_space<vmem>>, vector<8x128xf32>
    %23 = math.tanh %22 : vector<8x128xf32>
    %cst = arith.constant 0.000000e+00 : f32
    %24 = vector.broadcast %cst : f32 to vector<16x1xf32>
    %25 = vector.extract_strided_slice %21 {offsets = [0, 0], sizes = [16, 127], strides = [1, 1]} : vector<16x128xf32> to vector<16x127xf32>
    %26 = tpu.concatenate %24, %25 in 1 : vector<16x1xf32>, vector<16x127xf32> -> vector<16x128xf32>
    %c0_i32_7 = arith.constant 0 : i32
    %27 = arith.sitofp %c0_i32_7 : i32 to f32
    %28 = vector.shape_cast %18 : vector<1x128xi1> to vector<1x128xi1>
    %29 = vector.broadcast %28 : vector<1x128xi1> to vector<16x128xi1>
    %30 = vector.broadcast %27 : f32 to vector<16x128xf32>
    %31 = arith.select %29, %26, %30 : vector<16x128xi1>, vector<16x128xf32>
    %cst_8 = arith.constant 0.000000e+00 : f32
    %32 = vector.broadcast %cst_8 : f32 to vector<16x1xf32>
    %33 = vector.extract_strided_slice %21 {offsets = [0, 1], sizes = [16, 127], strides = [1, 1]} : vector<16x128xf32> to vector<16x127xf32>
    %34 = tpu.concatenate %33, %32 in 1 : vector<16x127xf32>, vector<16x1xf32> -> vector<16x128xf32>
    %c0_i32_9 = arith.constant 0 : i32
    %35 = arith.sitofp %c0_i32_9 : i32 to f32
    %36 = vector.shape_cast %20 : vector<1x128xi1> to vector<1x128xi1>
    %37 = vector.broadcast %36 : vector<1x128xi1> to vector<16x128xi1>
    %38 = vector.broadcast %35 : f32 to vector<16x128xf32>
    %39 = arith.select %37, %34, %38 : vector<16x128xi1>, vector<16x128xf32>
    %c0_10 = arith.constant 0 : index
    %c0_11 = arith.constant 0 : index
    %40 = vector.load %arg3[%c0_10, %c0_11] : memref<48x16xf32, #tpu.memory_space<vmem>>, vector<48x16xf32>
    %41 = vector.extract_strided_slice %40 {offsets = [0, 0], sizes = [16, 16], strides = [1, 1]} : vector<48x16xf32> to vector<16x16xf32>
    %cst_12 = arith.constant dense<0.000000e+00> : vector<16x128xf32>
    %42 = tpu.matmul %41, %31, %cst_12 {dimension_numbers = #tpu.dot_dimension_numbers<[1], [0], [0], [1], [0, 0, 1, 1], [], []>} : vector<16x16xf32>, vector<16x128xf32>, vector<16x128xf32> -> vector<16x128xf32>
    %43 = vector.extract_strided_slice %40 {offsets = [16, 0], sizes = [16, 16], strides = [1, 1]} : vector<48x16xf32> to vector<16x16xf32>
    %cst_13 = arith.constant dense<0.000000e+00> : vector<16x128xf32>
    %44 = tpu.matmul %43, %21, %cst_13 {dimension_numbers = #tpu.dot_dimension_numbers<[1], [0], [0], [1], [0, 0, 1, 1], [], []>} : vector<16x16xf32>, vector<16x128xf32>, vector<16x128xf32> -> vector<16x128xf32>
    %45 = arith.addf %42, %44 : vector<16x128xf32>
    %46 = vector.extract_strided_slice %40 {offsets = [32, 0], sizes = [16, 16], strides = [1, 1]} : vector<48x16xf32> to vector<16x16xf32>
    %cst_14 = arith.constant dense<0.000000e+00> : vector<16x128xf32>
    %47 = tpu.matmul %46, %39, %cst_14 {dimension_numbers = #tpu.dot_dimension_numbers<[1], [0], [0], [1], [0, 0, 1, 1], [], []>} : vector<16x16xf32>, vector<16x128xf32>, vector<16x128xf32> -> vector<16x128xf32>
    %48 = arith.addf %45, %47 : vector<16x128xf32>
    %c0_15 = arith.constant 0 : index
    %c0_16 = arith.constant 0 : index
    %49 = vector.load %arg4[%c0_15, %c0_16] : memref<16x1xf32, #tpu.memory_space<vmem>>, vector<16x1xf32>
    %50 = vector.broadcast %49 : vector<16x1xf32> to vector<16x128xf32>
    %51 = arith.addf %48, %50 : vector<16x128xf32>
    %cst_17 = arith.constant 0.000000e+00 : f32
    %52 = vector.broadcast %cst_17 : f32 to vector<16x128xf32>
    %53 = arith.maximumf %51, %52 : vector<16x128xf32>
    %c0_18 = arith.constant 0 : index
    %c0_19 = arith.constant 0 : index
    %54 = vector.load %arg5[%c0_18, %c0_19] : memref<32x8xf32, #tpu.memory_space<vmem>>, vector<32x8xf32>
    %cst_20 = arith.constant dense<0.000000e+00> : vector<32x128xf32>
    %55 = tpu.matmul %54, %23, %cst_20 {dimension_numbers = #tpu.dot_dimension_numbers<[1], [0], [0], [1], [0, 0, 1, 1], [], []>} : vector<32x8xf32>, vector<8x128xf32>, vector<32x128xf32> -> vector<32x128xf32>
    %c0_21 = arith.constant 0 : index
    %c0_22 = arith.constant 0 : index
    %56 = vector.load %arg6[%c0_21, %c0_22] : memref<32x1xf32, #tpu.memory_space<vmem>>, vector<32x1xf32>
    %57 = vector.broadcast %56 : vector<32x1xf32> to vector<32x128xf32>
    %58 = arith.addf %55, %57 : vector<32x128xf32>
    %59 = vector.extract_strided_slice %58 {offsets = [0, 0], sizes = [16, 128], strides = [1, 1]} : vector<32x128xf32> to vector<16x128xf32>
    %60 = arith.mulf %53, %59 : vector<16x128xf32>
    %61 = vector.extract_strided_slice %58 {offsets = [16, 0], sizes = [16, 128], strides = [1, 1]} : vector<32x128xf32> to vector<16x128xf32>
    %62 = arith.addf %60, %61 : vector<16x128xf32>
    %c0_23 = arith.constant 0 : index
    %c0_24 = arith.constant 0 : index
    %63 = vector.load %arg7[%c0_23, %c0_24] : memref<8x16xf32, #tpu.memory_space<vmem>>, vector<8x16xf32>
    %cst_25 = arith.constant dense<0.000000e+00> : vector<8x128xf32>
    %64 = tpu.matmul %63, %62, %cst_25 {dimension_numbers = #tpu.dot_dimension_numbers<[1], [0], [0], [1], [0, 0, 1, 1], [], []>} : vector<8x16xf32>, vector<16x128xf32>, vector<8x128xf32> -> vector<8x128xf32>
    %c0_26 = arith.constant 0 : index
    %c0_27 = arith.constant 0 : index
    %65 = vector.load %arg8[%c0_26, %c0_27] : memref<8x1xf32, #tpu.memory_space<vmem>>, vector<8x1xf32>
    %66 = vector.broadcast %65 : vector<8x1xf32> to vector<8x128xf32>
    %67 = arith.addf %64, %66 : vector<8x128xf32>
    %c0_28 = arith.constant 0 : index
    %c0_29 = arith.constant 0 : index
    %68 = vector.load %arg15[%c0_28, %c0_29] : memref<8x128xf32, #tpu.memory_space<vmem>>, vector<8x128xf32>
    tpu.vector_store %arg15[%c0_28, %c0_29], %67 {strides = array<i32>} : memref<8x128xf32, #tpu.memory_space<vmem>>, vector<8x128xf32>,
    %cst_30 = arith.constant 0.000000e+00 : f32
    %69 = vector.broadcast %cst_30 : f32 to vector<16x1xf32>
    %70 = vector.extract_strided_slice %21 {offsets = [0, 0], sizes = [16, 127], strides = [1, 1]} : vector<16x128xf32> to vector<16x127xf32>
    %71 = tpu.concatenate %69, %70 in 1 : vector<16x1xf32>, vector<16x127xf32> -> vector<16x128xf32>
    %c0_i32_31 = arith.constant 0 : i32
    %72 = arith.sitofp %c0_i32_31 : i32 to f32
    %73 = vector.shape_cast %18 : vector<1x128xi1> to vector<1x128xi1>
    %74 = vector.broadcast %73 : vector<1x128xi1> to vector<16x128xi1>
    %75 = vector.broadcast %72 : f32 to vector<16x128xf32>
    %76 = arith.select %74, %71, %75 : vector<16x128xi1>, vector<16x128xf32>
    %cst_32 = arith.constant 0.000000e+00 : f32
    %77 = vector.broadcast %cst_32 : f32 to vector<16x1xf32>
    %78 = vector.extract_strided_slice %21 {offsets = [0, 1], sizes = [16, 127], strides = [1, 1]} : vector<16x128xf32> to vector<16x127xf32>
    %79 = tpu.concatenate %78, %77 in 1 : vector<16x127xf32>, vector<16x1xf32> -> vector<16x128xf32>
    %c0_i32_33 = arith.constant 0 : i32
    %80 = arith.sitofp %c0_i32_33 : i32 to f32
    %81 = vector.shape_cast %20 : vector<1x128xi1> to vector<1x128xi1>
    %82 = vector.broadcast %81 : vector<1x128xi1> to vector<16x128xi1>
    %83 = vector.broadcast %80 : f32 to vector<16x128xf32>
    %84 = arith.select %82, %79, %83 : vector<16x128xi1>, vector<16x128xf32>
    %c0_34 = arith.constant 0 : index
    %c0_35 = arith.constant 0 : index
    %85 = vector.load %arg9[%c0_34, %c0_35] : memref<48x16xf32, #tpu.memory_space<vmem>>, vector<48x16xf32>
    %86 = vector.extract_strided_slice %85 {offsets = [0, 0], sizes = [16, 16], strides = [1, 1]} : vector<48x16xf32> to vector<16x16xf32>
    %cst_36 = arith.constant dense<0.000000e+00> : vector<16x128xf32>
    %87 = tpu.matmul %86, %76, %cst_36 {dimension_numbers = #tpu.dot_dimension_numbers<[1], [0], [0], [1], [0, 0, 1, 1], [], []>} : vector<16x16xf32>, vector<16x128xf32>, vector<16x128xf32> -> vector<16x128xf32>
    %88 = vector.extract_strided_slice %85 {offsets = [16, 0], sizes = [16, 16], strides = [1, 1]} : vector<48x16xf32> to vector<16x16xf32>
    %cst_37 = arith.constant dense<0.000000e+00> : vector<16x128xf32>
    %89 = tpu.matmul %88, %21, %cst_37 {dimension_numbers = #tpu.dot_dimension_numbers<[1], [0], [0], [1], [0, 0, 1, 1], [], []>} : vector<16x16xf32>, vector<16x128xf32>, vector<16x128xf32> -> vector<16x128xf32>
    %90 = arith.addf %87, %89 : vector<16x128xf32>
    %91 = vector.extract_strided_slice %85 {offsets = [32, 0], sizes = [16, 16], strides = [1, 1]} : vector<48x16xf32> to vector<16x16xf32>
    %cst_38 = arith.constant dense<0.000000e+00> : vector<16x128xf32>
    %92 = tpu.matmul %91, %84, %cst_38 {dimension_numbers = #tpu.dot_dimension_numbers<[1], [0], [0], [1], [0, 0, 1, 1], [], []>} : vector<16x16xf32>, vector<16x128xf32>, vector<16x128xf32> -> vector<16x128xf32>
    %93 = arith.addf %90, %92 : vector<16x128xf32>
    %c0_39 = arith.constant 0 : index
    %c0_40 = arith.constant 0 : index
    %94 = vector.load %arg10[%c0_39, %c0_40] : memref<16x1xf32, #tpu.memory_space<vmem>>, vector<16x1xf32>
    %95 = vector.broadcast %94 : vector<16x1xf32> to vector<16x128xf32>
    %96 = arith.addf %93, %95 : vector<16x128xf32>
    %cst_41 = arith.constant 0.000000e+00 : f32
    %97 = vector.broadcast %cst_41 : f32 to vector<16x128xf32>
    %98 = arith.maximumf %96, %97 : vector<16x128xf32>
    %c0_42 = arith.constant 0 : index
    %c0_43 = arith.constant 0 : index
    %99 = vector.load %arg11[%c0_42, %c0_43] : memref<32x8xf32, #tpu.memory_space<vmem>>, vector<32x8xf32>
    %cst_44 = arith.constant dense<0.000000e+00> : vector<32x128xf32>
    %100 = tpu.matmul %99, %23, %cst_44 {dimension_numbers = #tpu.dot_dimension_numbers<[1], [0], [0], [1], [0, 0, 1, 1], [], []>} : vector<32x8xf32>, vector<8x128xf32>, vector<32x128xf32> -> vector<32x128xf32>
    %c0_45 = arith.constant 0 : index
    %c0_46 = arith.constant 0 : index
    %101 = vector.load %arg12[%c0_45, %c0_46] : memref<32x1xf32, #tpu.memory_space<vmem>>, vector<32x1xf32>
    %102 = vector.broadcast %101 : vector<32x1xf32> to vector<32x128xf32>
    %103 = arith.addf %100, %102 : vector<32x128xf32>
    %104 = vector.extract_strided_slice %103 {offsets = [0, 0], sizes = [16, 128], strides = [1, 1]} : vector<32x128xf32> to vector<16x128xf32>
    %105 = arith.mulf %98, %104 : vector<16x128xf32>
    %106 = vector.extract_strided_slice %103 {offsets = [16, 0], sizes = [16, 128], strides = [1, 1]} : vector<32x128xf32> to vector<16x128xf32>
    %107 = arith.addf %105, %106 : vector<16x128xf32>
    %c0_47 = arith.constant 0 : index
    %c0_48 = arith.constant 0 : index
    %108 = vector.load %arg13[%c0_47, %c0_48] : memref<8x16xf32, #tpu.memory_space<vmem>>, vector<8x16xf32>
    %cst_49 = arith.constant dense<0.000000e+00> : vector<8x128xf32>
    %109 = tpu.matmul %108, %107, %cst_49 {dimension_numbers = #tpu.dot_dimension_numbers<[1], [0], [0], [1], [0, 0, 1, 1], [], []>} : vector<8x16xf32>, vector<16x128xf32>, vector<8x128xf32> -> vector<8x128xf32>
    %c0_50 = arith.constant 0 : index
    %c0_51 = arith.constant 0 : index
    %110 = vector.load %arg14[%c0_50, %c0_51] : memref<8x1xf32, #tpu.memory_space<vmem>>, vector<8x1xf32>
    %111 = vector.broadcast %110 : vector<8x1xf32> to vector<8x128xf32>
    %112 = arith.addf %109, %111 : vector<8x128xf32>
    %cst_52 = arith.constant 0.000000e+00 : f32
    %113 = vector.broadcast %cst_52 : f32 to vector<8x128xf32>
    %114 = arith.maximumf %112, %113 : vector<8x128xf32>
    %115 = math.absf %112 : vector<8x128xf32>
    %cst_53 = arith.constant 0.000000e+00 : f32
    %116 = vector.broadcast %cst_53 : f32 to vector<8x128xf32>
    %117 = arith.subf %116, %115 : vector<8x128xf32>
    %118 = math.exp %117 : vector<8x128xf32>
    %119 = math.log1p %118 : vector<8x128xf32>
    %120 = arith.addf %114, %119 : vector<8x128xf32>
    %c0_54 = arith.constant 0 : index
    %c0_55 = arith.constant 0 : index
    %121 = vector.load %arg16[%c0_54, %c0_55] : memref<8x128xf32, #tpu.memory_space<vmem>>, vector<8x128xf32>
    tpu.vector_store %arg16[%c0_54, %c0_55], %120 {strides = array<i32>} : memref<8x128xf32, #tpu.memory_space<vmem>>, vector<8x128xf32>,
    return
  }
  func.func @transform_0(%arg0: i32) -> (i32, i32) {
    %c0_i32 = arith.constant 0 : i32
    %c0_i32_0 = arith.constant 0 : i32
    return %c0_i32, %arg0 : i32, i32
  }
  func.func @transform_1(%arg0: i32) -> (i32, i32) {
    %c0_i32 = arith.constant 0 : i32
    %c0_i32_0 = arith.constant 0 : i32
    return %c0_i32, %arg0 : i32, i32
  }
  func.func @transform_2(%arg0: i32) -> (i32, i32) {
    %c0_i32 = arith.constant 0 : i32
    %c0_i32_0 = arith.constant 0 : i32
    %c0_i32_1 = arith.constant 0 : i32
    return %c0_i32, %c0_i32_0 : i32, i32
  }
  func.func @transform_3(%arg0: i32) -> (i32, i32) {
    %c0_i32 = arith.constant 0 : i32
    %c0_i32_0 = arith.constant 0 : i32
    %c0_i32_1 = arith.constant 0 : i32
    return %c0_i32, %c0_i32_0 : i32, i32
  }
  func.func @transform_4(%arg0: i32) -> (i32, i32) {
    %c0_i32 = arith.constant 0 : i32
    %c0_i32_0 = arith.constant 0 : i32
    %c0_i32_1 = arith.constant 0 : i32
    return %c0_i32, %c0_i32_0 : i32, i32
  }
  func.func @transform_5(%arg0: i32) -> (i32, i32) {
    %c0_i32 = arith.constant 0 : i32
    %c0_i32_0 = arith.constant 0 : i32
    %c0_i32_1 = arith.constant 0 : i32
    return %c0_i32, %c0_i32_0 : i32, i32
  }
  func.func @transform_6(%arg0: i32) -> (i32, i32) {
    %c0_i32 = arith.constant 0 : i32
    %c0_i32_0 = arith.constant 0 : i32
    %c0_i32_1 = arith.constant 0 : i32
    return %c0_i32, %c0_i32_0 : i32, i32
  }
  func.func @transform_7(%arg0: i32) -> (i32, i32) {
    %c0_i32 = arith.constant 0 : i32
    %c0_i32_0 = arith.constant 0 : i32
    %c0_i32_1 = arith.constant 0 : i32
    return %c0_i32, %c0_i32_0 : i32, i32
  }
  func.func @transform_8(%arg0: i32) -> (i32, i32) {
    %c0_i32 = arith.constant 0 : i32
    %c0_i32_0 = arith.constant 0 : i32
    %c0_i32_1 = arith.constant 0 : i32
    return %c0_i32, %c0_i32_0 : i32, i32
  }
  func.func @transform_9(%arg0: i32) -> (i32, i32) {
    %c0_i32 = arith.constant 0 : i32
    %c0_i32_0 = arith.constant 0 : i32
    %c0_i32_1 = arith.constant 0 : i32
    return %c0_i32, %c0_i32_0 : i32, i32
  }
  func.func @transform_10(%arg0: i32) -> (i32, i32) {
    %c0_i32 = arith.constant 0 : i32
    %c0_i32_0 = arith.constant 0 : i32
    %c0_i32_1 = arith.constant 0 : i32
    return %c0_i32, %c0_i32_0 : i32, i32
  }
  func.func @transform_11(%arg0: i32) -> (i32, i32) {
    %c0_i32 = arith.constant 0 : i32
    %c0_i32_0 = arith.constant 0 : i32
    %c0_i32_1 = arith.constant 0 : i32
    return %c0_i32, %c0_i32_0 : i32, i32
  }
  func.func @transform_12(%arg0: i32) -> (i32, i32) {
    %c0_i32 = arith.constant 0 : i32
    %c0_i32_0 = arith.constant 0 : i32
    %c0_i32_1 = arith.constant 0 : i32
    return %c0_i32, %c0_i32_0 : i32, i32
  }
  func.func @transform_13(%arg0: i32) -> (i32, i32) {
    %c0_i32 = arith.constant 0 : i32
    %c0_i32_0 = arith.constant 0 : i32
    %c0_i32_1 = arith.constant 0 : i32
    return %c0_i32, %c0_i32_0 : i32, i32
  }
  func.func @transform_14(%arg0: i32) -> (i32, i32) {
    %c0_i32 = arith.constant 0 : i32
    %c0_i32_0 = arith.constant 0 : i32
    return %c0_i32, %arg0 : i32, i32
  }
  func.func @transform_15(%arg0: i32) -> (i32, i32) {
    %c0_i32 = arith.constant 0 : i32
    %c0_i32_0 = arith.constant 0 : i32
    return %c0_i32, %arg0 : i32, i32
  }
}

</mosaic_0001>

<bundles_post_ra>
// kernel: separator_forward.3
= control target key start
LH: loop header
LB: loop body
LE: loop exit
PB: predicated region body
PF: predicated region fallthrough
CT: control target
= control target key end

     0   :  { %vm83_vm0 = vcmask 64512   ;;  %s1107_s27 = smov 1   ;;  %v1108_v5 = vmov 0   ;;  %s1109_s15 = smov 127   ;;  %v41_v13 = vlaneseq  ;;  %vm64_vm1 = vcmask 7168   ;;  %s1359_s0 = inlined_call_operand.vmem [shape: f32[8,128], index: 0, kind: input, shape index: {}]   ;;  %s1360_s2 = inlined_call_operand.vmem [shape: f32[48,8], index: 2, kind: input, shape index: {}]   ;;  %s1361_s3 = inlined_call_operand.vmem [shape: f32[16,1], index: 3, kind: input, shape index: {}]   ;;  %s1362_s5 = inlined_call_operand.vmem [shape: f32[32,1], index: 5, kind: input, shape index: {}]   ;;  %s1363_s1 = inlined_call_operand.vmem [shape: f32[8,128], index: 1, kind: input, shape index: {}]   ;;  %s1364_s4 = inlined_call_operand.vmem [shape: f32[32,8], index: 4, kind: input, shape index: {}]   ;;  %s1365_s6 = inlined_call_operand.vmem [shape: f32[48,16], index: 6, kind: input, shape index: {}]   ;;  %s1366_s7 = inlined_call_operand.vmem [shape: f32[16,1], index: 7, kind: input, shape index: {}]   ;;  %s1367_s9 = inlined_call_operand.vmem [shape: f32[32,1], index: 9, kind: input, shape index: {}]   ;;  %s1368_s11 = inlined_call_operand.vmem [shape: f32[8,1], index: 11, kind: input, shape index: {}]   ;;  %s1369_s8 = inlined_call_operand.vmem [shape: f32[32,8], index: 8, kind: input, shape index: {}]   ;;  %s1370_s10 = inlined_call_operand.vmem [shape: f32[8,16], index: 10, kind: input, shape index: {}]   ;;  %s1371_s12 = inlined_call_operand.vmem [shape: f32[8,128], index: 12, kind: output, shape index: {}]  }
   0x1   :  { %v57_v0 = vld [vmem:[%s1359_s0] sm:$0xff]  ;;  %v79_v1 = vld [vmem:[%s1360_s2 + $0x10] sm:$0xff]  ;;  %v80_v2 = vld [vmem:[%s1360_s2 + $0x18] sm:$0xff]  ;;  %1103 = vset.pattern.permute.xlu1 %v1108_v5  ;;  %1104 = vset.pattern.permute.xlu0 %v1108_v5  ;;  %vm72_vm3 = vcmask 1039360   ;;  %vm502_vm5 = vcmask 130048   ;;  %vm1111_vm6 = vmmov 0  }
   0x2   :  { %61 = vrot.lane.b32.xlu0 %v57_v0, %s1107_s27  ;;  %1039 = vmatprep.subr.mxu0 %v57_v0  ;;  %v77_v3 = vld [vmem:[%s1360_s2] sm:$0xff]  ;;  %v330_v6 = vld [vmem:[%s1361_s3 + $0x8] sm:$0xff]  ;;  %v351_v10 = vld [vmem:[%s1362_s5 + $0x10] sm:$0xff]  ;;  %v42_v14 = vand.u32 127, %v41_v13 }
   0x3   :  { %1040 = vmatpush3.msra.mxu0 %v57_v0  ;;  %1041 = vmatprep.mubr.msk.f32.mxu0 %vm83_vm0, %v79_v1  ;;  %v81_v4 = vld [vmem:[%s1360_s2 + $0x20] sm:$0xff]  ;;  %v350_v8 = vld [vmem:[%s1362_s5 + $0x8] sm:$0xff]  ;;  %v352_v11 = vld [vmem:[%s1362_s5 + $0x18] sm:$0xff] }
   0x4   :  { %1042 = vmatmul.mubr.msk.f32.vlgmr.msra.gmra.mxu0 %vm83_vm0, %v80_v2  ;;  %1046 = vmatprep.mubr.msk.f32.mxu1 %vm83_vm0, %v77_v3  ;;  %v329_v7 = vld [vmem:[%s1361_s3] sm:$0xff]  ;;  %v47_v15 = vand.u32 15, %v42_v14  ;;  %v78_v20 = vld [vmem:[%s1360_s2 + $0x8] sm:$0xff]  ;;  %v347_v27 = vld [vmem:[%s1364_s4 + $0x10] sm:$0xff] }
   0x5   :  { %1051 = vmatprep.mubr.msk.f32.mxu0 %vm83_vm0, %v81_v4  ;;  %338 = vperm.xlu1 %1103, %v330_v6   ;;  %v349_v9 = vld [vmem:[%s1362_s5] sm:$0xff]  ;;  %v82_v25 = vld [vmem:[%s1360_s2 + $0x28] sm:$0xff]  ;;  %v348_v28 = vld [vmem:[%s1364_s4 + $0x18] sm:$0xff] }
   0x6   :  { %69 = vrot.lane.b32.xlu0 %v57_v0, %s1109_s15  ;;  %v58_v12 = vld [vmem:[%s1363_s1] sm:$0xff]  ;;  %vm1219_vm2 = vcmp.ne.s32.totalorder %v47_v15, 0  ;;  %vm1236_vm4 = vcmp.ne.s32.totalorder %v47_v15, 15  ;;  %v346_v26 = vld [vmem:[%s1364_s4 + $0x8] sm:$0xff]  ;;  %v498_v33 = vld [vmem:[%s1365_s6 + $0x10] sm:$0xff] }
   0x7   :  { %1105 = vtanh.f32 %v58_v12  ;;  %v345_v21 = vld [vmem:[%s1364_s4] sm:$0xff]  ;;  %v499_v63 = vld [vmem:[%s1365_s6 + $0x18] sm:$0xff]  ;;  %v749_v1 = vld [vmem:[%s1366_s7 + $0x8] sm:$0xff] }
   0x8   :  { %v500_v51 = vld [vmem:[%s1365_s6 + $0x20] sm:$0xff]  ;;  %v769_v3 = vld [vmem:[%s1367_s9 + $0x8] sm:$0xff]  ;;  %v771_v5 = vld [vmem:[%s1367_s9 + $0x18] sm:$0xff] }
   0x9   :  { %333 = vperm.xlu1 %1103, %v329_v7   ;;  %v496_v0 = vld [vmem:[%s1365_s6] sm:$0xff]  ;;  %v770_v6 = vld [vmem:[%s1367_s9 + $0x10] sm:$0xff]  ;;  %v497_v12 = vld [vmem:[%s1365_s6 + $0x8] sm:$0xff] }
   0xa   :  { %360 = vperm.xlu0 %1104, %v350_v8   ;;  %v748_v2 = vld [vmem:[%s1366_s7] sm:$0xff]  ;;  %v501_v16 = vld [vmem:[%s1365_s6 + $0x28] sm:$0xff] }
   0xb   :  { %v768_v4 = vld [vmem:[%s1367_s9] sm:$0xff] }
   0xc   :  { %v894_v7 = vld [vmem:[%s1368_s11] sm:$0xff] }
   0xd   :  { %355 = vperm.xlu1 %1103, %v349_v9  }
   0xe   :  { %365 = vperm.xlu0 %1104, %v351_v10  }
  0x11   :  { %370 = vperm.xlu1 %1103, %v352_v11  }
  0x14   :  { %v1223_v18 = vpop.eup %1105 }
  0x74   :  { %v62_v17 = vpop.permute.xlu0 %61 }
  0x75   :  { %v65_v19 = vsel %vm64_vm1, 0.0, %v62_v17  ;;  %v764_v17 = vld [vmem:[%s1369_s8] sm:$0xff] }
  0x76   :  { %1044 = vmatprep.subr.msk.mxu1 %vm1219_vm2, %v65_v19 }
  0x77   :  { %1045 = vmatpush3.msk.msra.mxu1 %vm1219_vm2, %v65_v19 }
  0x78   :  { %1047 = vmatmul.mubr.msk.f32.vlgmr.msra.gmra.mxu1 %vm83_vm0, %v78_v20  ;;  %v70_v23 = vpop.permute.xlu0 %69  ;;  %1054 = vmatprep.subr.mxu1 %v1223_v18  ;;  %v765_v20 = vld [vmem:[%s1369_s8 + $0x8] sm:$0xff] }
  0x79   :  { %v73_v24 = vsel %vm72_vm3, %v70_v23, 0.0  ;;  %1055 = vmatpush3.msra.mxu1 %v1223_v18  ;;  %1056 = vmatprep.mubr.msk.f32.mxu1 %vm83_vm0, %v345_v21  ;;  %v766_v21 = vld [vmem:[%s1369_s8 + $0x10] sm:$0xff]  ;;  %v767_v23 = vld [vmem:[%s1369_s8 + $0x18] sm:$0xff] }
  0x7a   :  { %1049 = vmatprep.subr.msk.mxu0 %vm1236_vm4, %v73_v24 }
  0x7b   :  { %1050 = vmatpush3.msk.msra.mxu0 %vm1236_vm4, %v73_v24 }
  0x7c   :  { %1052 = vmatmul.mubr.msk.f32.vlgmr.msra.gmra.mxu0 %vm83_vm0, %v82_v25  ;;  %1057 = vmatmul.mubr.msk.f32.vlgmr.msra.gmra.mxu1 %vm83_vm0, %v346_v26 }
  0x7d   :  { %1059 = vmatprep.mubr.msk.f32.mxu1 %vm83_vm0, %v347_v27  ;;  %1066 = vmatprep.mubr.msk.f32.mxu0 %vm502_vm5, %v498_v33 }
  0x80   :  { %1060 = vmatmul.mubr.msk.f32.gmra.mxu1 %vm83_vm0, %v348_v28  ;;  %v339_v29 = vpop.permute.xlu1 %338 }
  0x81   :  { %1080 = vmatprep.mubr.msk.f32.mxu1 %vm502_vm5, %v500_v51 }
  0x84   :  { %v334_v30 = vpop.permute.xlu1 %333 }
  0x85   :  { %v361_v41 = vpop.permute.xlu0 %360 }
  0x88   :  { %v356_v36 = vpop.permute.xlu1 %355 }
  0x89   :  { %v366_v58 = vpop.permute.xlu0 %365 }
  0x8c   :  { %v371_v52 = vpop.permute.xlu1 %370 }
  0xc4   :  { %v1043_v31 = vpop.f32.mrf.mxu0 }
  0xc6   :  { %v156_v34 = vpop.f32.mrf.mxu0 }
 0x138   :  { %v1048_v32 = vpop.f32.mrf.mxu1 }
 0x139   :  { %v243_v37 = vadd.f32 %v1048_v32, %v1043_v31 }
 0x13a   :  { %v237_v35 = vpop.f32.mrf.mxu1 }
 0x13b   :  { %v238_v40 = vadd.f32 %v237_v35, %v156_v34 }
 0x13c   :  { %v1058_v38 = vpop.f32.mrf.mxu1  ;;  %v1053_v39 = vpop.f32.mrf.mxu0 }
 0x13d   :  { %v328_v42 = vadd.f32 %v1053_v39, %v243_v37  ;;  %v457_v48 = vadd.f32 %v1058_v38, %v361_v41 }
 0x13e   :  { %v318_v43 = vpop.f32.mrf.mxu0  ;;  %v451_v44 = vpop.f32.mrf.mxu1 }
 0x13f   :  { %v342_v45 = vadd.f32 %v339_v29, %v328_v42  ;;  %v327_v46 = vadd.f32 %v318_v43, %v238_v40  ;;  %v452_v55 = vadd.f32 %v451_v44, %v356_v36 }
 0x140   :  { %v1061_v47 = vpop.f32.mrf.mxu1 }
 0x141   :  { %v344_v49 = vmax.f32 %v342_v45, 0.0  ;;  %v341_v50 = vadd.f32 %v334_v30, %v327_v46  ;;  %v467_v56 = vadd.f32 %v1061_v47, %v371_v52 }
 0x142   :  { %v461_v53 = vpop.f32.mrf.mxu1 }
 0x143   :  { %v343_v54 = vmax.f32 %v341_v50, 0.0  ;;  %v471_v57 = vmul.f32 %v457_v48, %v344_v49  ;;  %v462_v61 = vadd.f32 %v461_v53, %v366_v58 }
 0x145   :  { %v470_v59 = vmul.f32 %v452_v55, %v343_v54  ;;  %v473_v60 = vadd.f32 %v471_v57, %v467_v56  ;;  %v893_v55 = vld [vmem:[%s1370_s10] sm:$0xff] }
 0x147   :  { %v472_v62 = vadd.f32 %v470_v59, %v462_v61  ;;  %478 = vrot.lane.b32.xlu1 %v473_v60, %s1107_s27  ;;  %1062 = vmatprep.subr.mxu0 %v473_v60 }
 0x148   :  { %1063 = vmatpush3.msra.mxu0 %v473_v60 }
 0x149   :  { %476 = vrot.lane.b32.xlu0 %v472_v62, %s1107_s27  ;;  %1064 = vmatprep.subr.mxu0 %v472_v62 }
 0x14a   :  { %1065 = vmatpush3.msra.mxu0 %v472_v62 }
 0x14b   :  { %488 = vrot.lane.b32.xlu1 %v473_v60, %s1109_s15  ;;  %1067 = vmatmul.mubr.msk.f32.vlgmr.msra.gmra.mxu0 %vm502_vm5, %v499_v63 }
 0x14c   :  { %1073 = vmatprep.mubr.msk.f32.mxu0 %vm502_vm5, %v496_v0 }
 0x14d   :  { %486 = vrot.lane.b32.xlu0 %v472_v62, %s1109_s15 }
 0x14f   :  { %757 = vperm.xlu1 %1103, %v749_v1  }
 0x151   :  { %752 = vperm.xlu0 %1104, %v748_v2  }
 0x153   :  { %779 = vperm.xlu1 %1103, %v769_v3  }
 0x155   :  { %774 = vperm.xlu0 %1104, %v768_v4  }
 0x157   :  { %789 = vperm.xlu1 %1103, %v771_v5  }
 0x159   :  { %784 = vperm.xlu0 %1104, %v770_v6  }
 0x15b   :  { %897 = vperm.xlu1 %1103, %v894_v7  }
 0x1b9   :  { %v479_v8 = vpop.permute.xlu1 %478 }
 0x1ba   :  { %v483_v9 = vsel %vm64_vm1, 0.0, %v479_v8 }
 0x1bb   :  { %v477_v10 = vpop.permute.xlu0 %476  ;;  %1069 = vmatprep.subr.msk.mxu0 %vm1219_vm2, %v483_v9 }
 0x1bc   :  { %v482_v11 = vsel %vm64_vm1, 0.0, %v477_v10  ;;  %1070 = vmatpush3.msk.msra.mxu0 %vm1219_vm2, %v483_v9 }
 0x1bd   :  { %v489_v13 = vpop.permute.xlu1 %488  ;;  %1071 = vmatprep.subr.msk.mxu0 %vm1219_vm2, %v482_v11 }
 0x1be   :  { %v493_v14 = vsel %vm72_vm3, %v489_v13, 0.0  ;;  %1072 = vmatpush3.msk.msra.mxu0 %vm1219_vm2, %v482_v11 }
 0x1bf   :  { %1076 = vmatprep.subr.msk.mxu1 %vm1236_vm4, %v493_v14  ;;  %v487_v15 = vpop.permute.xlu0 %486  ;;  %1074 = vmatmul.mubr.msk.f32.vlgmr.msra.gmra.mxu0 %vm502_vm5, %v497_v12 }
 0x1c0   :  { %v492_v19 = vsel %vm72_vm3, %v487_v15, 0.0  ;;  %1077 = vmatpush3.msk.msra.mxu1 %vm1236_vm4, %v493_v14  ;;  %1083 = vmatprep.subr.mxu0 %v1223_v18 }
 0x1c1   :  { %1078 = vmatprep.subr.msk.mxu1 %vm1236_vm4, %v492_v19  ;;  %1084 = vmatpush3.msra.mxu0 %v1223_v18  ;;  %v1110_v18 = vmov 0.0  }
 0x1c2   :  { %1079 = vmatpush3.msk.msra.mxu1 %vm1236_vm4, %v492_v19  ;;  %1085 = vmatprep.mubr.msk.f32.mxu0 %vm83_vm0, %v764_v17 }
 0x1c3   :  { %1081 = vmatmul.mubr.msk.f32.vlgmr.msra.gmra.mxu1 %vm502_vm5, %v501_v16  ;;  %1086 = vmatmul.mubr.msk.f32.vlgmr.msra.gmra.mxu0 %vm83_vm0, %v765_v20 }
 0x1c4   :  { %1088 = vmatprep.mubr.msk.f32.mxu0 %vm83_vm0, %v766_v21  ;;  %1091 = vmatprep.subr.mxu1 %v1110_v18 }
 0x1c5   :  { %1095 = vmatprep.mubr.msk.f32.mxu1 %vm1111_vm6, %v1110_v18 }
 0x1c7   :  { %1089 = vmatmul.mubr.msk.f32.gmra.mxu0 %vm83_vm0, %v767_v23 }
 0x1ca   :  { %v758_v25 = vpop.permute.xlu1 %757 }
 0x1cc   :  { %v753_v26 = vpop.permute.xlu0 %752 }
 0x1ce   :  { %v780_v29 = vpop.permute.xlu1 %779 }
 0x1d0   :  { %v775_v33 = vpop.permute.xlu0 %774 }
 0x1d2   :  { %v790_v44 = vpop.permute.xlu1 %789 }
 0x1d4   :  { %v785_v50 = vpop.permute.xlu0 %784 }
 0x1d6   :  { %v898_v56 = vpop.permute.xlu1 %897 }
 0x20b   :  { %v1068_v22 = vpop.f32.mrf.mxu0 }
 0x20d   :  { %v575_v24 = vpop.f32.mrf.mxu0 }
 0x27f   :  { %v1075_v27 = vpop.f32.mrf.mxu0 }
 0x280   :  { %v662_v30 = vadd.f32 %v1075_v27, %v1068_v22 }
 0x281   :  { %v656_v28 = vpop.f32.mrf.mxu0 }
 0x282   :  { %v657_v34 = vadd.f32 %v656_v28, %v575_v24 }
 0x283   :  { %v1082_v31 = vpop.f32.mrf.mxu1  ;;  %v1087_v32 = vpop.f32.mrf.mxu0 }
 0x284   :  { %v747_v35 = vadd.f32 %v1082_v31, %v662_v30  ;;  %v876_v42 = vadd.f32 %v1087_v32, %v780_v29 }
 0x285   :  { %v737_v36 = vpop.f32.mrf.mxu1  ;;  %v870_v37 = vpop.f32.mrf.mxu0 }
 0x286   :  { %v761_v38 = vadd.f32 %v758_v25, %v747_v35  ;;  %v746_v39 = vadd.f32 %v737_v36, %v657_v34  ;;  %v871_v48 = vadd.f32 %v870_v37, %v775_v33 }
 0x287   :  { %v1090_v40 = vpop.f32.mrf.mxu0 }
 0x288   :  { %v763_v41 = vmax.f32 %v761_v38, 0.0  ;;  %v760_v43 = vadd.f32 %v753_v26, %v746_v39  ;;  %v886_v49 = vadd.f32 %v1090_v40, %v790_v44 }
 0x289   :  { %v880_v45 = vpop.f32.mrf.mxu0 }
 0x28a   :  { %v890_v46 = vmul.f32 %v876_v42, %v763_v41  ;;  %v762_v47 = vmax.f32 %v760_v43, 0.0  ;;  %v881_v53 = vadd.f32 %v880_v45, %v785_v50 }
 0x28c   :  { %v889_v51 = vmul.f32 %v871_v48, %v762_v47  ;;  %v892_v52 = vadd.f32 %v890_v46, %v886_v49 }
 0x28e   :  { %v891_v54 = vadd.f32 %v889_v51, %v881_v53  ;;  %1092 = vmatpush3.msra.mxu1 %v892_v52 }
 0x28f   :  { %1093 = vmatprep.subr.mxu1 %v1110_v18 }
 0x290   :  { %1094 = vmatpush3.msra.mxu1 %v891_v54 }
 0x291   :  { %1096 = vmatmul.mubr.msk.f32.vlgmr.msra.gmra.mxu1 %vm502_vm5, %v893_v55 }
 0x351   :  { %v969_v57 = vpop.f32.mrf.mxu1 }
 0x352   :  { %v970_v58 = vadd.f32 %v969_v57, %v898_v56 }
 0x353   :  { %v1097_v59 = vpop.f32.mrf.mxu1 }
 0x354   :  { %973 = vst [vmem:[%s1371_s12] sm:$0xff] %v970_v58 }

// kernel: separator_forward.5
= control target key start
LH: loop header
LB: loop body
LE: loop exit
PB: predicated region body
PF: predicated region fallthrough
CT: control target
= control target key end

     0   :  { %vm103_vm0 = vcmask 130048   ;;  %s1231_s22 = smov 127   ;;  %s1232_s23 = smov 1   ;;  %v1233_v6 = vmov 0   ;;  %v49_v21 = vlaneseq  ;;  %vm90_vm1 = vcmask 1039360   ;;  %s1537_s0 = inlined_call_operand.vmem [shape: f32[16,128], index: 0, kind: input, shape index: {}]   ;;  %s1538_s2 = inlined_call_operand.vmem [shape: f32[48,16], index: 2, kind: input, shape index: {}]   ;;  %s1539_s3 = inlined_call_operand.vmem [shape: f32[16,1], index: 3, kind: input, shape index: {}]   ;;  %s1540_s5 = inlined_call_operand.vmem [shape: f32[32,1], index: 5, kind: input, shape index: {}]   ;;  %s1541_s9 = inlined_call_operand.vmem [shape: f32[16,1], index: 9, kind: input, shape index: {}]   ;;  %s1542_s11 = inlined_call_operand.vmem [shape: f32[32,1], index: 11, kind: input, shape index: {}]   ;;  %s1543_s13 = inlined_call_operand.vmem [shape: f32[8,1], index: 13, kind: input, shape index: {}]   ;;  %s1544_s7 = inlined_call_operand.vmem [shape: f32[8,1], index: 7, kind: input, shape index: {}]   ;;  %s1545_s1 = inlined_call_operand.vmem [shape: f32[8,128], index: 1, kind: input, shape index: {}]   ;;  %s1546_s4 = inlined_call_operand.vmem [shape: f32[32,8], index: 4, kind: input, shape index: {}]   ;;  %s1547_s8 = inlined_call_operand.vmem [shape: f32[48,16], index: 8, kind: input, shape index: {}]   ;;  %s1548_s10 = inlined_call_operand.vmem [shape: f32[32,8], index: 10, kind: input, shape index: {}]   ;;  %s1549_s6 = inlined_call_operand.vmem [shape: f32[8,16], index: 6, kind: input, shape index: {}]   ;;  %s1550_s14 = inlined_call_operand.vmem [shape: f32[8,128], index: 14, kind: output, shape index: {0}]   ;;  %s1551_s12 = inlined_call_operand.vmem [shape: f32[8,16], index: 12, kind: input, shape index: {}]   ;;  %s1552_s15 = inlined_call_operand.vmem [shape: f32[8,128], index: 15, kind: output, shape index: {1}]  }
   0x1   :  { %v1319_v0 = vld [vmem:[%s1537_s0 + $0x8] sm:$0xff]  ;;  %v99_v1 = vld [vmem:[%s1538_s2 + $0x10] sm:$0xff]  ;;  %v97_v2 = vld [vmem:[%s1538_s2] sm:$0xff]  ;;  %1224 = vset.pattern.permute.xlu1 %v1233_v6  ;;  %1223 = vset.pattern.permute.xlu0 %v1233_v6  ;;  %vm77_vm2 = vcmask 7168   ;;  %vm393_vm5 = vcmask 64512   ;;  %v1234_v48 = vmov 0.0  }
   0x2   :  { %86 = vrot.lane.b32.xlu1 %v1319_v0, %s1231_s22  ;;  %73 = vrot.lane.b32.xlu0 %v1319_v0, %s1232_s23  ;;  %v1332_v3 = vld [vmem:[%s1537_s0] sm:$0xff]  ;;  %v100_v4 = vld [vmem:[%s1538_s2 + $0x18] sm:$0xff]  ;;  %v50_v23 = vand.u32 127, %v49_v21  ;;  %vm1235_vm6 = vmmov 0  }
   0x3   :  { %1146 = vmatprep.subr.mxu0 %v1319_v0  ;;  %1150 = vmatprep.mubr.msk.f32.mxu0 %vm103_vm0, %v99_v1  ;;  %v101_v5 = vld [vmem:[%s1538_s2 + $0x20] sm:$0xff]  ;;  %v350_v8 = vld [vmem:[%s1539_s3 + $0x8] sm:$0xff]  ;;  %v372_v11 = vld [vmem:[%s1540_s5 + $0x18] sm:$0xff] }
   0x4   :  { %1147 = vmatpush3.msra.mxu0 %v1319_v0  ;;  %1157 = vmatprep.mubr.msk.f32.mxu1 %vm103_vm0, %v97_v2  ;;  %v349_v7 = vld [vmem:[%s1539_s3] sm:$0xff]  ;;  %v370_v9 = vld [vmem:[%s1540_s5 + $0x8] sm:$0xff]  ;;  %v371_v12 = vld [vmem:[%s1540_s5 + $0x10] sm:$0xff]  ;;  %v55_v24 = vand.u32 15, %v50_v23 }
   0x5   :  { %1148 = vmatprep.subr.mxu0 %v1332_v3  ;;  %v369_v10 = vld [vmem:[%s1540_s5] sm:$0xff]  ;;  %v828_v13 = vld [vmem:[%s1541_s9 + $0x8] sm:$0xff]  ;;  %v850_v17 = vld [vmem:[%s1542_s11 + $0x18] sm:$0xff] }
   0x6   :  { %84 = vrot.lane.b32.xlu1 %v1332_v3, %s1231_s22  ;;  %71 = vrot.lane.b32.xlu0 %v1332_v3, %s1232_s23  ;;  %v827_v14 = vld [vmem:[%s1541_s9] sm:$0xff]  ;;  %v848_v15 = vld [vmem:[%s1542_s11 + $0x8] sm:$0xff]  ;;  %vm1395_vm3 = vcmp.ne.s32.totalorder %v55_v24, 0  ;;  %vm1399_vm4 = vcmp.ne.s32.totalorder %v55_v24, 15 }
   0x7   :  { %1149 = vmatpush3.msra.mxu0 %v1332_v3  ;;  %v847_v16 = vld [vmem:[%s1542_s11] sm:$0xff]  ;;  %v849_v18 = vld [vmem:[%s1542_s11 + $0x10] sm:$0xff]  ;;  %v98_v35 = vld [vmem:[%s1538_s2 + $0x8] sm:$0xff] }
   0x8   :  { %1151 = vmatmul.mubr.msk.f32.vlgmr.msra.gmra.mxu0 %vm103_vm0, %v100_v4  ;;  %v973_v19 = vld [vmem:[%s1543_s13] sm:$0xff]  ;;  %v102_v36 = vld [vmem:[%s1538_s2 + $0x28] sm:$0xff]  ;;  %v367_v40 = vld [vmem:[%s1546_s4 + $0x10] sm:$0xff] }
   0x9   :  { %1164 = vmatprep.mubr.msk.f32.mxu0 %vm103_vm0, %v101_v5  ;;  %v496_v20 = vld [vmem:[%s1544_s7] sm:$0xff]  ;;  %v366_v39 = vld [vmem:[%s1546_s4 + $0x8] sm:$0xff]  ;;  %v368_v41 = vld [vmem:[%s1546_s4 + $0x18] sm:$0xff] }
   0xa   :  { %353 = vperm.xlu1 %1224, %v349_v7   ;;  %358 = vperm.xlu0 %1223, %v350_v8   ;;  %v67_v22 = vld [vmem:[%s1545_s1] sm:$0xff]  ;;  %v577_v43 = vld [vmem:[%s1547_s8 + $0x8] sm:$0xff]  ;;  %v845_v46 = vld [vmem:[%s1548_s10 + $0x10] sm:$0xff] }
   0xb   :  { %1225 = vtanh.f32 %v67_v22  ;;  %v365_v38 = vld [vmem:[%s1546_s4] sm:$0xff]  ;;  %v844_v45 = vld [vmem:[%s1548_s10 + $0x8] sm:$0xff]  ;;  %v846_v47 = vld [vmem:[%s1548_s10 + $0x18] sm:$0xff] }
   0xc   :  { %v576_v42 = vld [vmem:[%s1547_s8] sm:$0xff]  ;;  %v579_v21 = vld [vmem:[%s1547_s8 + $0x18] sm:$0xff] }
   0xd   :  { %v843_v44 = vld [vmem:[%s1548_s10] sm:$0xff] }
   0xe   :  { %380 = vperm.xlu1 %1224, %v370_v9   ;;  %375 = vperm.xlu0 %1223, %v369_v10   ;;  %v580_v22 = vld [vmem:[%s1547_s8 + $0x20] sm:$0xff] }
  0x12   :  { %390 = vperm.xlu1 %1224, %v372_v11   ;;  %385 = vperm.xlu0 %1223, %v371_v12  }
  0x16   :  { %836 = vperm.xlu1 %1224, %v828_v13   ;;  %831 = vperm.xlu0 %1223, %v827_v14  }
  0x18   :  { %v1226_v37 = vpop.eup %1225 }
  0x1a   :  { %858 = vperm.xlu1 %1224, %v848_v15   ;;  %853 = vperm.xlu0 %1223, %v847_v16  }
  0x1e   :  { %868 = vperm.xlu1 %1224, %v850_v17   ;;  %863 = vperm.xlu0 %1223, %v849_v18  }
  0x22   :  { %976 = vperm.xlu1 %1224, %v973_v19   ;;  %499 = vperm.xlu0 %1223, %v496_v20   ;;  %v495_v19 = vld [vmem:[%s1549_s6] sm:$0xff]  ;;  %v578_v20 = vld [vmem:[%s1547_s8 + $0x10] sm:$0xff] }
  0x74   :  { %v87_v27 = vpop.permute.xlu1 %86  ;;  %v74_v28 = vpop.permute.xlu0 %73 }
  0x75   :  { %v1403_v29 = vsel %vm90_vm1, %v87_v27, 0.0  ;;  %v79_v30 = vsel %vm77_vm2, 0.0, %v74_v28 }
  0x76   :  { %1153 = vmatprep.subr.msk.mxu1 %vm1395_vm3, %v79_v30  ;;  %1160 = vmatprep.subr.msk.mxu0 %vm1399_vm4, %v1403_v29 }
  0x77   :  { %1154 = vmatpush3.msk.msra.mxu1 %vm1395_vm3, %v79_v30  ;;  %1161 = vmatpush3.msk.msra.mxu0 %vm1399_vm4, %v1403_v29 }
  0x78   :  { %v85_v31 = vpop.permute.xlu1 %84  ;;  %v72_v32 = vpop.permute.xlu0 %71 }
  0x79   :  { %v1415_v33 = vsel %vm90_vm1, %v85_v31, 0.0  ;;  %v78_v34 = vsel %vm77_vm2, 0.0, %v72_v32 }
  0x7a   :  { %1155 = vmatprep.subr.msk.mxu1 %vm1395_vm3, %v78_v34  ;;  %1162 = vmatprep.subr.msk.mxu0 %vm1399_vm4, %v1415_v33 }
  0x7b   :  { %1156 = vmatpush3.msk.msra.mxu1 %vm1395_vm3, %v78_v34  ;;  %1163 = vmatpush3.msk.msra.mxu0 %vm1399_vm4, %v1415_v33 }
  0x7c   :  { %1158 = vmatmul.mubr.msk.f32.vlgmr.msra.gmra.mxu1 %vm103_vm0, %v98_v35  ;;  %1165 = vmatmul.mubr.msk.f32.vlgmr.msra.gmra.mxu0 %vm103_vm0, %v102_v36 }
  0x7d   :  { %1167 = vmatprep.subr.mxu1 %v1226_v37  ;;  %1169 = vmatprep.mubr.msk.f32.mxu1 %vm393_vm5, %v365_v38 }
  0x7e   :  { %1168 = vmatpush3.msra.mxu1 %v1226_v37  ;;  %1175 = vmatprep.subr.mxu0 %v1234_v48 }
  0x7f   :  { %1189 = vmatprep.subr.msk.mxu1 %vm1395_vm3, %v79_v30  ;;  %1179 = vmatprep.mubr.msk.f32.mxu0 %vm1235_vm6, %v1234_v48 }
  0x80   :  { %1170 = vmatmul.mubr.msk.f32.vlgmr.msra.gmra.mxu1 %vm393_vm5, %v366_v39 }
  0x81   :  { %1190 = vmatpush3.msk.msra.mxu1 %vm1395_vm3, %v79_v30  ;;  %1172 = vmatprep.mubr.msk.f32.mxu1 %vm393_vm5, %v367_v40 }
  0x82   :  { %1191 = vmatprep.subr.msk.mxu1 %vm1395_vm3, %v78_v34 }
  0x83   :  { %1192 = vmatpush3.msk.msra.mxu1 %vm1395_vm3, %v78_v34 }
  0x84   :  { %1173 = vmatmul.mubr.msk.f32.gmra.mxu1 %vm393_vm5, %v368_v41  ;;  %1203 = vmatprep.subr.mxu1 %v1226_v37 }
  0x85   :  { %1193 = vmatprep.mubr.msk.f32.mxu1 %vm103_vm0, %v576_v42  ;;  %v354_v50 = vpop.permute.xlu1 %353  ;;  %v359_v52 = vpop.permute.xlu0 %358 }
  0x88   :  { %1194 = vmatmul.mubr.msk.f32.vlgmr.msra.gmra.mxu1 %vm103_vm0, %v577_v43 }
  0x89   :  { %1204 = vmatpush3.msra.mxu1 %v1226_v37  ;;  %1205 = vmatprep.mubr.msk.f32.mxu1 %vm393_vm5, %v843_v44  ;;  %v381_v56 = vpop.permute.xlu1 %380  ;;  %v376_v58 = vpop.permute.xlu0 %375 }
  0x8c   :  { %1206 = vmatmul.mubr.msk.f32.vlgmr.msra.gmra.mxu1 %vm393_vm5, %v844_v45 }
  0x8d   :  { %1208 = vmatprep.mubr.msk.f32.mxu1 %vm393_vm5, %v845_v46  ;;  %v391_v7 = vpop.permute.xlu1 %390  ;;  %v386_v13 = vpop.permute.xlu0 %385 }
  0x90   :  { %1209 = vmatmul.mubr.msk.f32.gmra.mxu1 %vm393_vm5, %v846_v47 }
  0x91   :  { %v837_v30 = vpop.permute.xlu1 %836 }
  0x95   :  { %v859_v37 = vpop.permute.xlu1 %858 }
  0xc8   :  { %v1152_v49 = vpop.f32.mrf.mxu0 }
  0xca   :  { %v176_v51 = vpop.f32.mrf.mxu0 }
 0x13c   :  { %v1159_v53 = vpop.f32.mrf.mxu1  ;;  %v1166_v54 = vpop.f32.mrf.mxu0 }
 0x13d   :  { %v263_v55 = vadd.f32 %v1159_v53, %v1152_v49  ;;  %v869_v49 = vpop.permute.xlu1 %868 }
 0x13e   :  { %v257_v57 = vpop.f32.mrf.mxu1  ;;  %v338_v61 = vpop.f32.mrf.mxu0 }
 0x13f   :  { %v348_v59 = vadd.f32 %v1166_v54, %v263_v55  ;;  %v258_v60 = vadd.f32 %v257_v57, %v176_v51 }
 0x140   :  { %v1171_v62 = vpop.f32.mrf.mxu1 }
 0x141   :  { %v362_v63 = vadd.f32 %v359_v52, %v348_v59  ;;  %v347_v1 = vadd.f32 %v338_v61, %v258_v60  ;;  %v478_v6 = vadd.f32 %v1171_v62, %v381_v56  ;;  %v972_v59 = vld [vmem:[%s1551_s12] sm:$0xff]  ;;  %v977_v60 = vpop.permute.xlu1 %976 }
 0x142   :  { %v472_v2 = vpop.f32.mrf.mxu1 }
 0x143   :  { %v364_v4 = vmax.f32 %v362_v63, 0.0  ;;  %v361_v5 = vadd.f32 %v354_v50, %v347_v1  ;;  %v473_v11 = vadd.f32 %v472_v2, %v376_v58 }
 0x144   :  { %v1174_v8 = vpop.f32.mrf.mxu1 }
 0x145   :  { %v363_v9 = vmax.f32 %v361_v5, 0.0  ;;  %v492_v10 = vmul.f32 %v478_v6, %v364_v4  ;;  %v488_v12 = vadd.f32 %v1174_v8, %v391_v7 }
 0x146   :  { %v482_v14 = vpop.f32.mrf.mxu1 }
 0x147   :  { %v491_v15 = vmul.f32 %v473_v11, %v363_v9  ;;  %v494_v16 = vadd.f32 %v492_v10, %v488_v12  ;;  %v483_v17 = vadd.f32 %v482_v14, %v386_v13 }
 0x148   :  { %v1195_v25 = vpop.f32.mrf.mxu1 }
 0x149   :  { %v493_v18 = vadd.f32 %v491_v15, %v483_v17  ;;  %1176 = vmatpush3.msra.mxu0 %v494_v16 }
 0x14a   :  { %1177 = vmatprep.subr.mxu0 %v1234_v48  ;;  %v735_v27 = vpop.f32.mrf.mxu1 }
 0x14b   :  { %1178 = vmatpush3.msra.mxu0 %v493_v18 }
 0x14c   :  { %1180 = vmatmul.mubr.msk.f32.vlgmr.msra.gmra.mxu0 %vm103_vm0, %v495_v19  ;;  %1182 = vmatprep.subr.mxu0 %v1319_v0  ;;  %v1207_v32 = vpop.f32.mrf.mxu1 }
 0x14d   :  { %1183 = vmatpush3.msra.mxu0 %v1319_v0  ;;  %1186 = vmatprep.mubr.msk.f32.mxu0 %vm103_vm0, %v578_v20  ;;  %v581_v0 = vld [vmem:[%s1547_s8 + $0x28] sm:$0xff]  ;;  %v955_v45 = vadd.f32 %v1207_v32, %v859_v37 }
 0x14e   :  { %1184 = vmatprep.subr.mxu0 %v1332_v3 }
 0x14f   :  { %1185 = vmatpush3.msra.mxu0 %v1332_v3  ;;  %v832_v3 = vpop.permute.xlu0 %831 }
 0x150   :  { %1187 = vmatmul.mubr.msk.f32.vlgmr.msra.gmra.mxu0 %vm103_vm0, %v579_v21  ;;  %1196 = vmatprep.subr.msk.mxu0 %vm1399_vm4, %v1403_v29 }
 0x151   :  { %1197 = vmatpush3.msk.msra.mxu0 %vm1399_vm4, %v1403_v29  ;;  %1200 = vmatprep.mubr.msk.f32.mxu0 %vm103_vm0, %v580_v22 }
 0x152   :  { %1198 = vmatprep.subr.msk.mxu0 %vm1399_vm4, %v1415_v33 }
 0x153   :  { %1199 = vmatpush3.msk.msra.mxu0 %vm1399_vm4, %v1415_v33  ;;  %v854_v23 = vpop.permute.xlu0 %853  ;;  %v949_v33 = vpop.f32.mrf.mxu1 }
 0x154   :  { %1201 = vmatmul.mubr.msk.f32.vlgmr.msra.gmra.mxu0 %vm103_vm0, %v581_v0  ;;  %1211 = vmatprep.subr.mxu0 %v1234_v48  ;;  %v950_v51 = vadd.f32 %v949_v33, %v854_v23 }
 0x155   :  { %1215 = vmatprep.mubr.msk.f32.mxu0 %vm1235_vm6, %v1234_v48  ;;  %v1210_v41 = vpop.f32.mrf.mxu1 }
 0x156   :  { %v965_v52 = vadd.f32 %v1210_v41, %v869_v49 }
 0x157   :  { %v864_v24 = vpop.permute.xlu0 %863  ;;  %v959_v50 = vpop.f32.mrf.mxu1 }
 0x158   :  { %v960_v55 = vadd.f32 %v959_v50, %v864_v24 }
 0x15b   :  { %v500_v28 = vpop.permute.xlu0 %499 }
 0x20c   :  { %v571_v29 = vpop.f32.mrf.mxu0 }
 0x20d   :  { %v572_v31 = vadd.f32 %v571_v29, %v500_v28 }
 0x20e   :  { %v1181_v34 = vpop.f32.mrf.mxu0 }
 0x20f   :  { %575 = vst [vmem:[%s1550_s14] sm:$0xff] %v572_v31 }
 0x210   :  { %v1188_v26 = vpop.f32.mrf.mxu0 }
 0x211   :  { %v741_v36 = vadd.f32 %v1195_v25, %v1188_v26 }
 0x212   :  { %v654_v35 = vpop.f32.mrf.mxu0 }
 0x213   :  { %v736_v39 = vadd.f32 %v735_v27, %v654_v35 }
 0x214   :  { %v1202_v38 = vpop.f32.mrf.mxu0 }
 0x215   :  { %v826_v40 = vadd.f32 %v1202_v38, %v741_v36 }
 0x216   :  { %v816_v42 = vpop.f32.mrf.mxu0 }
 0x217   :  { %v840_v43 = vadd.f32 %v837_v30, %v826_v40  ;;  %v825_v44 = vadd.f32 %v816_v42, %v736_v39 }
 0x219   :  { %v842_v46 = vmax.f32 %v840_v43, 0.0  ;;  %v839_v47 = vadd.f32 %v832_v3, %v825_v44 }
 0x21b   :  { %v969_v53 = vmul.f32 %v955_v45, %v842_v46  ;;  %v841_v54 = vmax.f32 %v839_v47, 0.0 }
 0x21d   :  { %v971_v56 = vadd.f32 %v969_v53, %v965_v52  ;;  %v968_v57 = vmul.f32 %v950_v51, %v841_v54 }
 0x21f   :  { %v970_v58 = vadd.f32 %v968_v57, %v960_v55  ;;  %1212 = vmatpush3.msra.mxu0 %v971_v56 }
 0x220   :  { %1213 = vmatprep.subr.mxu0 %v1234_v48 }
 0x221   :  { %1214 = vmatpush3.msra.mxu0 %v970_v58 }
 0x222   :  { %1216 = vmatmul.mubr.msk.f32.vlgmr.msra.gmra.mxu0 %vm103_vm0, %v972_v59 }
 0x2e2   :  { %v1048_v61 = vpop.f32.mrf.mxu0 }
 0x2e3   :  { %v1049_v62 = vadd.f32 %v1048_v61, %v977_v60 }
 0x2e4   :  { %v1217_v63 = vpop.f32.mrf.mxu0 }
 0x2e5   :  { %v1053_v1 = vand.u32 2147483647, %v1049_v62  ;;  %v1052_v12 = vmax.f32 %v1049_v62, 0.0 }
 0x2e7   :  { %v1054_v2 = vsub.f32 0.0, %v1053_v1 }
 0x2e9   :  { %v1055_v4 = vmul.f32 1.442695, %v1054_v2 }
 0x2eb   :  { %1227 = vpow2.f32 %v1055_v4 }
 0x2f8   :  { %v1228_v5 = vpop.eup %1227 }
 0x2f9   :  { %v1057_v6 = vadd.f32 1.0, %v1228_v5  ;;  %v1060_v7 = vmul.f32 -0.5, %v1228_v5  ;;  %v1063_v9 = vand.u32 2147483647, %v1228_v5 }
 0x2fb   :  { %1229 = vlog2.f32 %v1057_v6  ;;  %v1061_v8 = vadd.f32 1.0, %v1060_v7  ;;  %vm1064_vm7 = vcmp.lt.f32.partialorder %v1063_v9, 0.0004427343 }
 0x2fd   :  { %v1062_v48 = vmul.f32 %v1228_v5, %v1061_v8 }
 0x308   :  { %v1230_v10 = vpop.eup %1229 }
 0x309   :  { %v1059_v11 = vmul.f32 0.6931472, %v1230_v10 }
 0x30b   :  { %v1065_v13 = vsel %vm1064_vm7, %v1062_v48, %v1059_v11 }
 0x30c   :  { %v1066_v14 = vadd.f32 %v1065_v13, %v1052_v12 }
 0x30e   :  { %1067 = vst [vmem:[%s1552_s15] sm:$0xff] %v1066_v14 }

// kernel: separator_forward.4
= control target key start
LH: loop header
LB: loop body
LE: loop exit
PB: predicated region body
PF: predicated region fallthrough
CT: control target
= control target key end

     0   :  { %vm91_vm0 = vcmask 64512   ;;  %s1206_s24 = smov 1   ;;  %s1207_s28 = smov 127   ;;  %v1208_v5 = vmov 0   ;;  %v49_v22 = vlaneseq  ;;  %vm72_vm1 = vcmask 7168   ;;  %s1481_s0 = inlined_call_operand.vmem [shape: f32[8,128], index: 0, kind: input, shape index: {}]   ;;  %s1482_s2 = inlined_call_operand.vmem [shape: f32[48,8], index: 2, kind: input, shape index: {}]   ;;  %s1483_s3 = inlined_call_operand.vmem [shape: f32[16,1], index: 3, kind: input, shape index: {}]   ;;  %s1484_s5 = inlined_call_operand.vmem [shape: f32[32,1], index: 5, kind: input, shape index: {}]   ;;  %s1485_s9 = inlined_call_operand.vmem [shape: f32[16,1], index: 9, kind: input, shape index: {}]   ;;  %s1486_s11 = inlined_call_operand.vmem [shape: f32[32,1], index: 11, kind: input, shape index: {}]   ;;  %s1487_s13 = inlined_call_operand.vmem [shape: f32[16,1], index: 13, kind: input, shape index: {}]   ;;  %s1488_s7 = inlined_call_operand.vmem [shape: f32[8,1], index: 7, kind: input, shape index: {}]   ;;  %s1489_s1 = inlined_call_operand.vmem [shape: f32[8,128], index: 1, kind: input, shape index: {}]   ;;  %s1490_s4 = inlined_call_operand.vmem [shape: f32[32,8], index: 4, kind: input, shape index: {}]   ;;  %s1491_s8 = inlined_call_operand.vmem [shape: f32[48,8], index: 8, kind: input, shape index: {}]   ;;  %s1492_s10 = inlined_call_operand.vmem [shape: f32[32,8], index: 10, kind: input, shape index: {}]   ;;  %s1493_s6 = inlined_call_operand.vmem [shape: f32[8,16], index: 6, kind: input, shape index: {}]   ;;  %s1494_s12 = inlined_call_operand.vmem [shape: f32[16,16], index: 12, kind: input, shape index: {}]   ;;  %s1495_s14 = inlined_call_operand.vmem [shape: f32[8,128], index: 14, kind: output, shape index: {0}]   ;;  %s1496_s15 = inlined_call_operand.vmem [shape: f32[16,128], index: 15, kind: output, shape index: {1}]  }
   0x1   :  { %v1294_v0 = vld [vmem:[%s1481_s0] sm:$0xff]  ;;  %v87_v1 = vld [vmem:[%s1482_s2 + $0x10] sm:$0xff]  ;;  %v88_v3 = vld [vmem:[%s1482_s2 + $0x18] sm:$0xff]  ;;  %1198 = vset.pattern.permute.xlu1 %v1208_v5  ;;  %1199 = vset.pattern.permute.xlu0 %v1208_v5  ;;  %vm80_vm3 = vcmask 1039360   ;;  %v1209_v44 = vmov 0.0   ;;  %vm1210_vm5 = vmmov 0  }
   0x2   :  { %v85_v2 = vld [vmem:[%s1482_s2] sm:$0xff]  ;;  %69 = vrot.lane.b32.xlu0 %v1294_v0, %s1206_s24  ;;  %1133 = vmatprep.subr.mxu0 %v1294_v0  ;;  %v338_v6 = vld [vmem:[%s1483_s3 + $0x8] sm:$0xff]  ;;  %v359_v9 = vld [vmem:[%s1484_s5 + $0x10] sm:$0xff]  ;;  %v50_v23 = vand.u32 127, %v49_v22  ;;  %vm489_vm6 = vcmask 130048  }
   0x3   :  { %1134 = vmatpush3.msra.mxu0 %v1294_v0  ;;  %1135 = vmatprep.mubr.msk.f32.mxu0 %vm91_vm0, %v87_v1  ;;  %v89_v4 = vld [vmem:[%s1482_s2 + $0x20] sm:$0xff]  ;;  %v358_v8 = vld [vmem:[%s1484_s5 + $0x8] sm:$0xff]  ;;  %v360_v12 = vld [vmem:[%s1484_s5 + $0x18] sm:$0xff] }
   0x4   :  { %1140 = vmatprep.mubr.msk.f32.mxu1 %vm91_vm0, %v85_v2  ;;  %1136 = vmatmul.mubr.msk.f32.vlgmr.msra.gmra.mxu0 %vm91_vm0, %v88_v3  ;;  %v337_v7 = vld [vmem:[%s1483_s3] sm:$0xff]  ;;  %v822_v14 = vld [vmem:[%s1485_s9 + $0x8] sm:$0xff]  ;;  %v843_v15 = vld [vmem:[%s1486_s11 + $0x10] sm:$0xff]  ;;  %v55_v24 = vand.u32 15, %v50_v23 }
   0x5   :  { %1145 = vmatprep.mubr.msk.f32.mxu0 %vm91_vm0, %v89_v4  ;;  %346 = vperm.xlu1 %1198, %v338_v6   ;;  %v357_v10 = vld [vmem:[%s1484_s5] sm:$0xff]  ;;  %v842_v16 = vld [vmem:[%s1486_s11 + $0x8] sm:$0xff]  ;;  %v844_v18 = vld [vmem:[%s1486_s11 + $0x18] sm:$0xff] }
   0x6   :  { %77 = vrot.lane.b32.xlu0 %v1294_v0, %s1207_s28  ;;  %v821_v11 = vld [vmem:[%s1485_s9] sm:$0xff]  ;;  %v969_v20 = vld [vmem:[%s1487_s13 + $0x8] sm:$0xff]  ;;  %vm1364_vm2 = vcmp.ne.s32.totalorder %v55_v24, 0  ;;  %vm1378_vm4 = vcmp.ne.s32.totalorder %v55_v24, 15  ;;  %v355_v36 = vld [vmem:[%s1490_s4 + $0x10] sm:$0xff] }
   0x7   :  { %v841_v13 = vld [vmem:[%s1486_s11] sm:$0xff]  ;;  %v86_v29 = vld [vmem:[%s1482_s2 + $0x8] sm:$0xff]  ;;  %v356_v37 = vld [vmem:[%s1490_s4 + $0x18] sm:$0xff] }
   0x8   :  { %v968_v17 = vld [vmem:[%s1487_s13] sm:$0xff]  ;;  %v90_v34 = vld [vmem:[%s1482_s2 + $0x28] sm:$0xff]  ;;  %v839_v42 = vld [vmem:[%s1492_s10 + $0x10] sm:$0xff] }
   0x9   :  { %341 = vperm.xlu1 %1198, %v337_v7   ;;  %v483_v19 = vld [vmem:[%s1488_s7] sm:$0xff]  ;;  %v354_v35 = vld [vmem:[%s1490_s4 + $0x8] sm:$0xff]  ;;  %v840_v43 = vld [vmem:[%s1492_s10 + $0x18] sm:$0xff] }
   0xa   :  { %368 = vperm.xlu0 %1199, %v358_v8   ;;  %v66_v21 = vld [vmem:[%s1489_s1] sm:$0xff]  ;;  %v571_v39 = vld [vmem:[%s1491_s8 + $0x8] sm:$0xff] }
   0xb   :  { %1200 = vtanh.f32 %v66_v21  ;;  %v353_v30 = vld [vmem:[%s1490_s4] sm:$0xff]  ;;  %v838_v41 = vld [vmem:[%s1492_s10 + $0x8] sm:$0xff] }
   0xc   :  { %v570_v38 = vld [vmem:[%s1491_s8] sm:$0xff] }
   0xd   :  { %363 = vperm.xlu1 %1198, %v357_v10   ;;  %v837_v40 = vld [vmem:[%s1492_s10] sm:$0xff] }
   0xe   :  { %373 = vperm.xlu0 %1199, %v359_v9  }
  0x11   :  { %378 = vperm.xlu1 %1198, %v360_v12  }
  0x12   :  { %825 = vperm.xlu0 %1199, %v821_v11  }
  0x15   :  { %830 = vperm.xlu1 %1198, %v822_v14   ;;  %v482_v14 = vld [vmem:[%s1493_s6] sm:$0xff] }
  0x16   :  { %847 = vperm.xlu0 %1199, %v841_v13  }
  0x18   :  { %v1201_v27 = vpop.eup %1200 }
  0x19   :  { %852 = vperm.xlu1 %1198, %v842_v16   ;;  %v573_v16 = vld [vmem:[%s1491_s8 + $0x18] sm:$0xff] }
  0x1a   :  { %857 = vperm.xlu0 %1199, %v843_v15   ;;  %v572_v15 = vld [vmem:[%s1491_s8 + $0x10] sm:$0xff] }
  0x1d   :  { %862 = vperm.xlu1 %1198, %v844_v18   ;;  %v966_v18 = vld [vmem:[%s1494_s12] sm:$0xff] }
  0x1e   :  { %972 = vperm.xlu0 %1199, %v968_v17   ;;  %v574_v17 = vld [vmem:[%s1491_s8 + $0x20] sm:$0xff] }
  0x21   :  { %486 = vperm.xlu1 %1198, %v483_v19  }
  0x25   :  { %977 = vperm.xlu1 %1198, %v969_v20  }
  0x74   :  { %v70_v26 = vpop.permute.xlu0 %69 }
  0x75   :  { %v73_v28 = vsel %vm72_vm1, 0.0, %v70_v26 }
  0x76   :  { %1138 = vmatprep.subr.msk.mxu1 %vm1364_vm2, %v73_v28 }
  0x77   :  { %1139 = vmatpush3.msk.msra.mxu1 %vm1364_vm2, %v73_v28 }
  0x78   :  { %1141 = vmatmul.mubr.msk.f32.vlgmr.msra.gmra.mxu1 %vm91_vm0, %v86_v29  ;;  %1148 = vmatprep.subr.mxu1 %v1201_v27  ;;  %v78_v32 = vpop.permute.xlu0 %77 }
  0x79   :  { %v1383_v33 = vsel %vm80_vm3, %v78_v32, 0.0  ;;  %1149 = vmatpush3.msra.mxu1 %v1201_v27  ;;  %1150 = vmatprep.mubr.msk.f32.mxu1 %vm91_vm0, %v353_v30 }
  0x7a   :  { %1143 = vmatprep.subr.msk.mxu0 %vm1378_vm4, %v1383_v33  ;;  %1168 = vmatprep.subr.msk.mxu1 %vm1364_vm2, %v73_v28 }
  0x7b   :  { %1144 = vmatpush3.msk.msra.mxu0 %vm1378_vm4, %v1383_v33 }
  0x7c   :  { %1146 = vmatmul.mubr.msk.f32.vlgmr.msra.gmra.mxu0 %vm91_vm0, %v90_v34  ;;  %1151 = vmatmul.mubr.msk.f32.vlgmr.msra.gmra.mxu1 %vm91_vm0, %v354_v35 }
  0x7d   :  { %1169 = vmatpush3.msk.msra.mxu1 %vm1364_vm2, %v73_v28  ;;  %1153 = vmatprep.mubr.msk.f32.mxu1 %vm91_vm0, %v355_v36 }
  0x7e   :  { %1178 = vmatprep.subr.mxu1 %v1201_v27  ;;  %1156 = vmatprep.subr.mxu0 %v1209_v44 }
  0x7f   :  { %1160 = vmatprep.mubr.msk.f32.mxu0 %vm1210_vm5, %v1209_v44 }
  0x80   :  { %1154 = vmatmul.mubr.msk.f32.gmra.mxu1 %vm91_vm0, %v356_v37  ;;  %v347_v45 = vpop.permute.xlu1 %346 }
  0x81   :  { %1170 = vmatprep.mubr.msk.f32.mxu1 %vm91_vm0, %v570_v38 }
  0x84   :  { %1171 = vmatmul.mubr.msk.f32.vlgmr.msra.gmra.mxu1 %vm91_vm0, %v571_v39  ;;  %v342_v46 = vpop.permute.xlu1 %341 }
  0x85   :  { %1179 = vmatpush3.msra.mxu1 %v1201_v27  ;;  %1180 = vmatprep.mubr.msk.f32.mxu1 %vm91_vm0, %v837_v40  ;;  %v369_v55 = vpop.permute.xlu0 %368 }
  0x88   :  { %1181 = vmatmul.mubr.msk.f32.vlgmr.msra.gmra.mxu1 %vm91_vm0, %v838_v41  ;;  %v364_v51 = vpop.permute.xlu1 %363 }
  0x89   :  { %1183 = vmatprep.mubr.msk.f32.mxu1 %vm91_vm0, %v839_v42  ;;  %v374_v9 = vpop.permute.xlu0 %373 }
  0x8c   :  { %1184 = vmatmul.mubr.msk.f32.gmra.mxu1 %vm91_vm0, %v840_v43  ;;  %v379_v3 = vpop.permute.xlu1 %378 }
  0x8d   :  { %v826_v29 = vpop.permute.xlu0 %825 }
  0x90   :  { %v831_v19 = vpop.permute.xlu1 %830 }
  0x91   :  { %v848_v37 = vpop.permute.xlu0 %847 }
  0x94   :  { %v853_v20 = vpop.permute.xlu1 %852 }
  0x98   :  { %v863_v21 = vpop.permute.xlu1 %862 }
  0x9c   :  { %v487_v24 = vpop.permute.xlu1 %486 }
  0xc4   :  { %v1137_v47 = vpop.f32.mrf.mxu0 }
  0xc6   :  { %v164_v50 = vpop.f32.mrf.mxu0 }
 0x138   :  { %v1142_v48 = vpop.f32.mrf.mxu1 }
 0x139   :  { %v251_v52 = vadd.f32 %v1142_v48, %v1137_v47 }
 0x13a   :  { %v245_v49 = vpop.f32.mrf.mxu1 }
 0x13b   :  { %v246_v56 = vadd.f32 %v245_v49, %v164_v50 }
 0x13c   :  { %v1147_v53 = vpop.f32.mrf.mxu0  ;;  %v1152_v54 = vpop.f32.mrf.mxu1 }
 0x13d   :  { %v336_v57 = vadd.f32 %v1147_v53, %v251_v52  ;;  %v465_v1 = vadd.f32 %v1152_v54, %v369_v55  ;;  %v858_v52 = vpop.permute.xlu0 %857 }
 0x13e   :  { %v459_v58 = vpop.f32.mrf.mxu1  ;;  %v326_v59 = vpop.f32.mrf.mxu0 }
 0x13f   :  { %v350_v60 = vadd.f32 %v347_v45, %v336_v57  ;;  %v335_v61 = vadd.f32 %v326_v59, %v246_v56  ;;  %v460_v6 = vadd.f32 %v459_v58, %v364_v51  ;;  %v967_v58 = vld [vmem:[%s1494_s12 + $0x8] sm:$0xff] }
 0x140   :  { %v1155_v62 = vpop.f32.mrf.mxu1 }
 0x141   :  { %v352_v63 = vmax.f32 %v350_v60, 0.0  ;;  %v349_v2 = vadd.f32 %v342_v46, %v335_v61  ;;  %v475_v8 = vadd.f32 %v1155_v62, %v379_v3  ;;  %v978_v61 = vpop.permute.xlu1 %977 }
 0x142   :  { %v469_v4 = vpop.f32.mrf.mxu1 }
 0x143   :  { %v479_v5 = vmul.f32 %v465_v1, %v352_v63  ;;  %v351_v7 = vmax.f32 %v349_v2, 0.0  ;;  %v470_v11 = vadd.f32 %v469_v4, %v374_v9  ;;  %v973_v1 = vpop.permute.xlu0 %972 }
 0x144   :  { %v1172_v22 = vpop.f32.mrf.mxu1 }
 0x145   :  { %v481_v10 = vadd.f32 %v479_v5, %v475_v8  ;;  %v478_v12 = vmul.f32 %v460_v6, %v351_v7 }
 0x146   :  { %v729_v23 = vpop.f32.mrf.mxu1 }
 0x147   :  { %v480_v13 = vadd.f32 %v478_v12, %v470_v11  ;;  %1157 = vmatpush3.msra.mxu0 %v481_v10 }
 0x148   :  { %1158 = vmatprep.subr.mxu0 %v1209_v44  ;;  %v1182_v27 = vpop.f32.mrf.mxu1 }
 0x149   :  { %1159 = vmatpush3.msra.mxu0 %v480_v13  ;;  %v949_v44 = vadd.f32 %v1182_v27, %v853_v20 }
 0x14a   :  { %1161 = vmatmul.mubr.msk.f32.vlgmr.msra.gmra.mxu0 %vm489_vm6, %v482_v14  ;;  %1163 = vmatprep.subr.mxu0 %v1294_v0 }
 0x14b   :  { %1164 = vmatpush3.msra.mxu0 %v1294_v0  ;;  %1165 = vmatprep.mubr.msk.f32.mxu0 %vm91_vm0, %v572_v15  ;;  %v575_v0 = vld [vmem:[%s1491_s8 + $0x28] sm:$0xff] }
 0x14c   :  { %1173 = vmatprep.subr.msk.mxu0 %vm1378_vm4, %v1383_v33 }
 0x14e   :  { %1166 = vmatmul.mubr.msk.f32.vlgmr.msra.gmra.mxu0 %vm91_vm0, %v573_v16 }
 0x14f   :  { %1174 = vmatpush3.msk.msra.mxu0 %vm1378_vm4, %v1383_v33  ;;  %1175 = vmatprep.mubr.msk.f32.mxu0 %vm91_vm0, %v574_v17  ;;  %v943_v33 = vpop.f32.mrf.mxu1 }
 0x150   :  { %v944_v48 = vadd.f32 %v943_v33, %v848_v37 }
 0x151   :  { %v1185_v40 = vpop.f32.mrf.mxu1 }
 0x152   :  { %1176 = vmatmul.mubr.msk.f32.vlgmr.msra.gmra.mxu0 %vm91_vm0, %v575_v0  ;;  %v959_v49 = vadd.f32 %v1185_v40, %v863_v21 }
 0x153   :  { %1190 = vmatprep.mubr.msk.f32.mxu0 %vm489_vm6, %v966_v18  ;;  %v953_v47 = vpop.f32.mrf.mxu1 }
 0x154   :  { %v954_v53 = vadd.f32 %v953_v47, %v858_v52 }
 0x20a   :  { %v559_v25 = vpop.f32.mrf.mxu0 }
 0x20b   :  { %v560_v26 = vadd.f32 %v559_v25, %v487_v24 }
 0x20c   :  { %v1162_v28 = vpop.f32.mrf.mxu0 }
 0x20d   :  { %v563_v30 = vsub.f32 0.0, %v560_v26 }
 0x20e   :  { %v1167_v31 = vpop.f32.mrf.mxu0 }
 0x20f   :  { %v564_v32 = vmul.f32 1.442695, %v563_v30  ;;  %v735_v35 = vadd.f32 %v1172_v22, %v1167_v31 }
 0x210   :  { %v648_v34 = vpop.f32.mrf.mxu0 }
 0x211   :  { %1202 = vpow2.f32 %v564_v32  ;;  %v730_v38 = vadd.f32 %v729_v23, %v648_v34 }
 0x212   :  { %v1177_v36 = vpop.f32.mrf.mxu0 }
 0x213   :  { %v820_v39 = vadd.f32 %v1177_v36, %v735_v35 }
 0x214   :  { %v810_v41 = vpop.f32.mrf.mxu0 }
 0x215   :  { %v834_v42 = vadd.f32 %v831_v19, %v820_v39  ;;  %v819_v43 = vadd.f32 %v810_v41, %v730_v38 }
 0x217   :  { %v836_v45 = vmax.f32 %v834_v42, 0.0  ;;  %v833_v46 = vadd.f32 %v826_v29, %v819_v43 }
 0x219   :  { %v963_v50 = vmul.f32 %v949_v44, %v836_v45  ;;  %v835_v51 = vmax.f32 %v833_v46, 0.0 }
 0x21b   :  { %v962_v54 = vmul.f32 %v944_v48, %v835_v51  ;;  %v965_v55 = vadd.f32 %v963_v50, %v959_v49 }
 0x21d   :  { %1186 = vmatprep.subr.mxu0 %v965_v55  ;;  %v964_v56 = vadd.f32 %v962_v54, %v954_v53 }
 0x21e   :  { %v1203_v57 = vpop.eup %1202  ;;  %1187 = vmatpush3.msra.mxu0 %v965_v55 }
 0x21f   :  { %v566_v59 = vadd.f32 1.0, %v1203_v57  ;;  %1188 = vmatprep.subr.mxu0 %v964_v56 }
 0x220   :  { %1189 = vmatpush3.msra.mxu0 %v964_v56 }
 0x221   :  { %1204 = vrcp.f32 %v566_v59  ;;  %1191 = vmatmul.mubr.msk.f32.vlgmr.msra.gmra.mxu0 %vm489_vm6, %v967_v58 }
 0x22e   :  { %v1205_v60 = vpop.eup %1204 }
 0x22f   :  { %569 = vst [vmem:[%s1495_s14] sm:$0xff] %v1205_v60 }
 0x2e1   :  { %v1192_v62 = vpop.f32.mrf.mxu0 }
 0x2e2   :  { %v1058_v63 = vadd.f32 %v1192_v62, %v978_v61 }
 0x2e3   :  { %v1052_v2 = vpop.f32.mrf.mxu0 }
 0x2e4   :  { %1062 = vst [vmem:[%s1496_s15 + $0x8] sm:$0xff] %v1058_v63  ;;  %v1053_v3 = vadd.f32 %v1052_v2, %v973_v1 }
 0x2e6   :  { %1061 = vst [vmem:[%s1496_s15] sm:$0xff] %v1053_v3 }

</bundles_post_ra>
